<compile_context>
chip_gen: v6e
topology: v6e:2x2x1
jax: 0.10.0
libtpu: 0.0.40
codegen_flags: <defaults>
</compile_context>

<pallas_src>
import jax
import jax.numpy as jnp
from jax.experimental import pallas as pl
from jax.experimental.pallas import tpu as pltpu

# ---------------- small GPT-2-style config (synthetic weights) ----------------
VOCAB = 128
N_EMBD = 32
N_HEAD = 4
HEAD_DIM = N_EMBD // N_HEAD
N_LAYER = 2
N_POS = 32
LN_EPS = 1e-5
NEG = -1e9
GELU_C = 0.7978845608028654  # sqrt(2/pi)
ATTN_SCALE = 1.0 / float(HEAD_DIM) ** 0.5


# ------------------------------ fused forward kernel ------------------------------
def _make_fused_kernel(S):
    D, H, Dh = N_EMBD, N_HEAD, HEAD_DIM
    HS = H * S

    def kernel(mask_ref, h_ref,
               caw_ref, cab_ref, cpw_ref, cpb_ref,
               ln1g_ref, ln1b_ref, ln2g_ref, ln2b_ref,
               fcw_ref, fcb_ref, pw_ref, pb_ref,
               lnfg_ref, lnfb_ref, wte_ref,
               out_ref):
        def ln(x, g, b):
            mu = jnp.mean(x, axis=-1, keepdims=True)
            var = jnp.mean(jnp.square(x - mu), axis=-1, keepdims=True)
            return (x - mu) * jax.lax.rsqrt(var + LN_EPS) * g + b

        def mm(a, b):
            return jnp.dot(a, b, preferred_element_type=jnp.float32)

        def mm_nt(a, b):  # a @ b.T without materializing a transpose
            return jax.lax.dot_general(
                a, b, (((1,), (1,)), ((), ())), preferred_element_type=jnp.float32)

        h = h_ref[...]                                   # (S, D) residual stream, VMEM-resident
        pad_row = mask_ref[0]                            # (1, S) key-padding mask for this batch
        pad_hs = jnp.concatenate([pad_row] * H, axis=1)  # (1, H*S): pad per packed key column

        # Block-diagonal (head) + causal + padding keep-mask, built once from tiny iotas
        # (no //, %, no pre-materialized additive-mask tensors).
        pos_col = jax.lax.broadcasted_iota(jnp.int32, (S, 1), 0)     # (S, 1)
        pos_row = jax.lax.broadcasted_iota(jnp.int32, (1, S), 1)     # (1, S)
        qpos = jnp.concatenate([pos_col] * H, axis=0)                # (HS, 1)
        kpos = jnp.concatenate([pos_row] * H, axis=1)                # (1, HS)
        qhead = jnp.concatenate(
            [jnp.full((S, 1), hh, jnp.int32) for hh in range(H)], axis=0)   # (HS, 1)
        khead = jnp.concatenate(
            [jnp.full((1, S), hh, jnp.int32) for hh in range(H)], axis=1)   # (1, HS)
        keep = (qhead == khead) & (qpos >= kpos) & (pad_hs > 0.5)    # (HS, HS) bool

        for l in range(N_LAYER):
            # ---------------- attention block ----------------
            x = ln(h, ln1g_ref[l], ln1b_ref[l])
            qkv = mm(x, caw_ref[l]) + cab_ref[l]                     # (S, 3D): ONE fused QKV matmul
            q = qkv[:, 0:D] * ATTN_SCALE                             # scale folded into q
            k = qkv[:, D:2 * D]
            v = qkv[:, 2 * D:3 * D]

            # pack heads along sublanes -> (H*S, Dh); one score matmul for all heads
            q_all = jnp.concatenate([q[:, hh * Dh:(hh + 1) * Dh] for hh in range(H)], axis=0)
            k_all = jnp.concatenate([k[:, hh * Dh:(hh + 1) * Dh] for hh in range(H)], axis=0)
            v_all = jnp.concatenate([v[:, hh * Dh:(hh + 1) * Dh] for hh in range(H)], axis=0)

            s = mm_nt(q_all, k_all)                                  # (HS, HS)
            s = jnp.where(keep, s, NEG)
            smax = jnp.max(s, axis=-1, keepdims=True)
            p = jnp.exp(s - smax)
            denom = jnp.sum(p, axis=-1, keepdims=True)
            p = p * pl.reciprocal(denom, approx=True)
            ctx_all = mm(p, v_all)                                   # (HS, Dh)

            # unpack heads lane-dense -> (S, D), ONE output-projection matmul
            ctx = jnp.concatenate(
                [ctx_all[hh * S:(hh + 1) * S, :] for hh in range(H)], axis=1)   # (S, D)
            h = h + mm(ctx, cpw_ref[l]) + cpb_ref[l]

            # ---------------- MLP block ----------------
            x = ln(h, ln2g_ref[l], ln2b_ref[l])
            m1 = mm(x, fcw_ref[l]) + fcb_ref[l]                      # (S, 4D)
            g1 = 0.5 * m1 * (1.0 + jnp.tanh(GELU_C * (m1 + 0.044715 * m1 * m1 * m1)))
            h = h + mm(g1, pw_ref[l]) + pb_ref[l]

        h = ln(h, lnfg_ref[...], lnfb_ref[...])
        # tied lm_head (no bias): logits = h @ wte.T via transposed contraction
        out_ref[...] = mm_nt(h, wte_ref[...])                        # (S, VOCAB), lane-dense

    return kernel


# ------------------------------ model definition ------------------------------
def init_params(key):
    def norm(k, shape, scale=0.02):
        return (scale * jax.random.normal(k, shape, dtype=jnp.float32)).astype(jnp.float32)

    keys = jax.random.split(key, 2 + N_LAYER)
    params = {
        "wte": norm(keys[0], (VOCAB, N_EMBD)),
        "wpe": norm(keys[1], (N_POS, N_EMBD)),
        "lnf_g": jnp.ones((N_EMBD,), jnp.float32),
        "lnf_b": jnp.zeros((N_EMBD,), jnp.float32),
        "layers": [],
    }
    for l in range(N_LAYER):
        lk = jax.random.split(keys[2 + l], 4)
        params["layers"].append(
            {
                "ln1_g": jnp.ones((N_EMBD,), jnp.float32),
                "ln1_b": jnp.zeros((N_EMBD,), jnp.float32),
                "c_attn_w": norm(lk[0], (N_EMBD, 3 * N_EMBD)),
                "c_attn_b": jnp.zeros((3 * N_EMBD,), jnp.float32),
                "c_proj_w": norm(lk[1], (N_EMBD, N_EMBD)),
                "c_proj_b": jnp.zeros((N_EMBD,), jnp.float32),
                "ln2_g": jnp.ones((N_EMBD,), jnp.float32),
                "ln2_b": jnp.zeros((N_EMBD,), jnp.float32),
                "fc_w": norm(lk[2], (N_EMBD, 4 * N_EMBD)),
                "fc_b": jnp.zeros((4 * N_EMBD,), jnp.float32),
                "proj_w": norm(lk[3], (4 * N_EMBD, N_EMBD)),
                "proj_b": jnp.zeros((N_EMBD,), jnp.float32),
            }
        )
    return params


def gpt2_wrapper_forward(params, input_ids, attention_mask):
    """Equivalent of GPT2Wrapper.forward({'input_ids':..., 'attention_mask':...})."""
    B, S = input_ids.shape
    BS = B * S
    L, D, H, Dh, V = N_LAYER, N_EMBD, N_HEAD, HEAD_DIM, VOCAB

    # --- embeddings (gather = glue) ---
    h = params["wte"][input_ids] + params["wpe"][jnp.arange(S)][None, :, :]
    h = h.reshape(BS, D).astype(jnp.float32)

    # key-padding mask, (B, 1, S); causal + block-diag parts are built in-kernel
    maskf = attention_mask.astype(jnp.float32).reshape(B, 1, S)

    # --- stack per-layer weights; keep every last dim lane-dense (D, 3D, 4D, V) ---
    def stack(name):
        return jnp.stack([lyr[name] for lyr in params["layers"]], axis=0)

    caw = stack("c_attn_w")                               # (L, D, 3D)
    cab = stack("c_attn_b").reshape(L, 1, 3 * D)          # (L, 1, 3D)
    cpw = stack("c_proj_w")                               # (L, D, D)
    cpb = stack("c_proj_b").reshape(L, 1, D)
    ln1g = stack("ln1_g").reshape(L, 1, D)
    ln1b = stack("ln1_b").reshape(L, 1, D)
    ln2g = stack("ln2_g").reshape(L, 1, D)
    ln2b = stack("ln2_b").reshape(L, 1, D)
    fcw = stack("fc_w")                                   # (L, D, 4D)
    fcb = stack("fc_b").reshape(L, 1, 4 * D)
    pw = stack("proj_w")                                  # (L, 4D, D)
    pb = stack("proj_b").reshape(L, 1, D)
    lnfg = params["lnf_g"].reshape(1, D)
    lnfb = params["lnf_b"].reshape(1, D)
    wte = params["wte"]                                   # (V, D)

    inputs = (maskf, h, caw, cab, cpw, cpb, ln1g, ln1b, ln2g, ln2b,
              fcw, fcb, pw, pb, lnfg, lnfb, wte)

    def rep_spec(a):  # weights: full block, replicated across the parallel grid axis
        nd = a.ndim
        return pl.BlockSpec(a.shape, lambda b, nd=nd: (0,) * nd)

    in_specs = [
        pl.BlockSpec((1, 1, S), lambda b: (b, 0, 0)),     # maskf
        pl.BlockSpec((S, D), lambda b: (b, 0)),           # residual stream rows of this batch
    ] + [rep_spec(a) for a in inputs[2:]]

    out_specs = pl.BlockSpec((S, V), lambda b: (b, 0))    # lane-dense (S, 128) logits tile

    # advisory cost estimate (whole call)
    HS = H * S
    mm_flops = B * L * (2 * S * D * 3 * D         # fused qkv
                        + 2 * HS * Dh * HS        # packed scores
                        + 2 * HS * HS * Dh        # packed p@v
                        + 2 * S * D * D           # c_proj
                        + 2 * S * D * 4 * D       # fc
                        + 2 * S * 4 * D * D)      # mlp proj
    mm_flops += 2 * BS * D * V                    # lm_head
    transc = B * L * (HS * HS + HS + S * 4 * D + 2 * S) + BS
    bytes_acc = sum(int(a.size) * a.dtype.itemsize for a in inputs) + BS * V * 4

    kernel_fn = pl.pallas_call(
        _make_fused_kernel(S),
        out_shape=jax.ShapeDtypeStruct((BS, V), jnp.float32),
        grid=(B,),
        in_specs=in_specs,
        out_specs=out_specs,
        compiler_params=pltpu.CompilerParams(
            dimension_semantics=("parallel",),            # v7x: one batch per TensorCore
            vmem_limit_bytes=32 * 1024 * 1024),
        cost_estimate=pl.CostEstimate(flops=int(mm_flops),
                                      transcendentals=int(transc),
                                      bytes_accessed=int(bytes_acc)),
    )
    logits = kernel_fn(*inputs)
    # torch: logits.reshape(-1, vocab) — already (B*S, VOCAB)
    # TODO(synk): labels/loss computed inside HF forward are discarded by the wrapper; only logits returned.
    return logits


# ------------------------------------ main ------------------------------------
if __name__ == "__main__":
    key = jax.random.PRNGKey(0)
    pkey, ikey = jax.random.split(key)

    params = init_params(pkey)

    B, S = 2, 8
    input_ids = jax.random.randint(ikey, (B, S), 0, VOCAB, dtype=jnp.int32)
    attention_mask = jnp.array(
        [[1, 1, 1, 1, 1, 1, 1, 1],
         [1, 1, 1, 1, 1, 1, 0, 0]], dtype=jnp.int32
    )

    fwd = jax.jit(gpt2_wrapper_forward)
    logits = fwd(params, input_ids, attention_mask)
    jax.block_until_ready(logits)

    assert logits.shape == (B * S, VOCAB), logits.shape
    assert logits.dtype == jnp.float32
    print("KERNEL_OK")
</pallas_src>

<mosaic_0001>
module attributes {stable_mosaic.version = 11 : i64} {
  func.func @kernel(%arg0: i32, %arg1: memref<1x1x8xf32, #tpu.memory_space<vmem>>, %arg2: memref<8x32xf32, #tpu.memory_space<vmem>>, %arg3: memref<2x32x96xf32, #tpu.memory_space<vmem>>, %arg4: memref<2x1x96xf32, #tpu.memory_space<vmem>>, %arg5: memref<2x32x32xf32, #tpu.memory_space<vmem>>, %arg6: memref<2x1x32xf32, #tpu.memory_space<vmem>>, %arg7: memref<2x1x32xf32, #tpu.memory_space<vmem>>, %arg8: memref<2x1x32xf32, #tpu.memory_space<vmem>>, %arg9: memref<2x1x32xf32, #tpu.memory_space<vmem>>, %arg10: memref<2x1x32xf32, #tpu.memory_space<vmem>>, %arg11: memref<2x32x128xf32, #tpu.memory_space<vmem>>, %arg12: memref<2x1x128xf32, #tpu.memory_space<vmem>>, %arg13: memref<2x128x32xf32, #tpu.memory_space<vmem>>, %arg14: memref<2x1x32xf32, #tpu.memory_space<vmem>>, %arg15: memref<1x32xf32, #tpu.memory_space<vmem>>, %arg16: memref<1x32xf32, #tpu.memory_space<vmem>>, %arg17: memref<128x32xf32, #tpu.memory_space<vmem>>, %arg18: memref<8x128xf32, #tpu.memory_space<vmem>>) attributes {dimension_semantics = [#tpu.dimension_semantics<parallel>], iteration_bounds = array<i64: 2>, scalar_prefetch = 0 : i64, scratch_operands = 0 : i64, tpu.core_type = #tpu.core_type<tc>, window_params = [{transform_indices = @transform_0, window_bounds = array<i64: 1, 1, 8>}, {transform_indices = @transform_1, window_bounds = array<i64: 8, 32>}, {pipeline_mode = #tpu.pipeline_mode<synchronous>, transform_indices = @transform_2, window_bounds = array<i64: 2, 32, 96>}, {pipeline_mode = #tpu.pipeline_mode<synchronous>, transform_indices = @transform_3, window_bounds = array<i64: 2, 1, 96>}, {pipeline_mode = #tpu.pipeline_mode<synchronous>, transform_indices = @transform_4, window_bounds = array<i64: 2, 32, 32>}, {pipeline_mode = #tpu.pipeline_mode<synchronous>, transform_indices = @transform_5, window_bounds = array<i64: 2, 1, 32>}, {pipeline_mode = #tpu.pipeline_mode<synchronous>, transform_indices = @transform_6, window_bounds = array<i64: 2, 1, 32>}, {pipeline_mode = #tpu.pipeline_mode<synchronous>, transform_indices = @transform_7, window_bounds = array<i64: 2, 1, 32>}, {pipeline_mode = #tpu.pipeline_mode<synchronous>, transform_indices = @transform_8, window_bounds = array<i64: 2, 1, 32>}, {pipeline_mode = #tpu.pipeline_mode<synchronous>, transform_indices = @transform_9, window_bounds = array<i64: 2, 1, 32>}, {pipeline_mode = #tpu.pipeline_mode<synchronous>, transform_indices = @transform_10, window_bounds = array<i64: 2, 32, 128>}, {pipeline_mode = #tpu.pipeline_mode<synchronous>, transform_indices = @transform_11, window_bounds = array<i64: 2, 1, 128>}, {pipeline_mode = #tpu.pipeline_mode<synchronous>, transform_indices = @transform_12, window_bounds = array<i64: 2, 128, 32>}, {pipeline_mode = #tpu.pipeline_mode<synchronous>, transform_indices = @transform_13, window_bounds = array<i64: 2, 1, 32>}, {pipeline_mode = #tpu.pipeline_mode<synchronous>, transform_indices = @transform_14, window_bounds = array<i64: 1, 32>}, {pipeline_mode = #tpu.pipeline_mode<synchronous>, transform_indices = @transform_15, window_bounds = array<i64: 1, 32>}, {pipeline_mode = #tpu.pipeline_mode<synchronous>, transform_indices = @transform_16, window_bounds = array<i64: 128, 32>}, {transform_indices = @transform_17, window_bounds = array<i64: 8, 128>}]} {
    %c0 = arith.constant 0 : index
    %c0_0 = arith.constant 0 : index
    %0 = vector.load %arg2[%c0, %c0_0] : memref<8x32xf32, #tpu.memory_space<vmem>>, vector<8x32xf32>
    %c0_1 = arith.constant 0 : index
    %c0_2 = arith.constant 0 : index
    %c0_3 = arith.constant 0 : index
    %1 = vector.load %arg1[%c0_1, %c0_2, %c0_3] : memref<1x1x8xf32, #tpu.memory_space<vmem>>, vector<1x1x8xf32>
    %2 = vector.shape_cast %1 : vector<1x1x8xf32> to vector<1x8xf32>
    %3 = tpu.concatenate %2, %2, %2, %2 in 1 : vector<1x8xf32>, vector<1x8xf32>, vector<1x8xf32>, vector<1x8xf32> -> vector<1x32xf32>
    %4 = tpu.iota {dimensions = array<i32: 0>} : vector<8x1xi32>
    %5 = tpu.iota {dimensions = array<i32: 1>} : vector<1x8xi32>
    %6 = tpu.concatenate %4, %4, %4, %4 in 0 : vector<8x1xi32>, vector<8x1xi32>, vector<8x1xi32>, vector<8x1xi32> -> vector<32x1xi32>
    %7 = tpu.concatenate %5, %5, %5, %5 in 1 : vector<1x8xi32>, vector<1x8xi32>, vector<1x8xi32>, vector<1x8xi32> -> vector<1x32xi32>
    %c0_i32 = arith.constant 0 : i32
    %8 = vector.broadcast %c0_i32 : i32 to vector<8x1xi32>
    %c1_i32 = arith.constant 1 : i32
    %9 = vector.broadcast %c1_i32 : i32 to vector<8x1xi32>
    %c2_i32 = arith.constant 2 : i32
    %10 = vector.broadcast %c2_i32 : i32 to vector<8x1xi32>
    %c3_i32 = arith.constant 3 : i32
    %11 = vector.broadcast %c3_i32 : i32 to vector<8x1xi32>
    %12 = tpu.concatenate %8, %9, %10, %11 in 0 : vector<8x1xi32>, vector<8x1xi32>, vector<8x1xi32>, vector<8x1xi32> -> vector<32x1xi32>
    %c0_i32_4 = arith.constant 0 : i32
    %13 = vector.broadcast %c0_i32_4 : i32 to vector<1x8xi32>
    %c1_i32_5 = arith.constant 1 : i32
    %14 = vector.broadcast %c1_i32_5 : i32 to vector<1x8xi32>
    %c2_i32_6 = arith.constant 2 : i32
    %15 = vector.broadcast %c2_i32_6 : i32 to vector<1x8xi32>
    %c3_i32_7 = arith.constant 3 : i32
    %16 = vector.broadcast %c3_i32_7 : i32 to vector<1x8xi32>
    %17 = tpu.concatenate %13, %14, %15, %16 in 1 : vector<1x8xi32>, vector<1x8xi32>, vector<1x8xi32>, vector<1x8xi32> -> vector<1x32xi32>
    %18 = vector.broadcast %12 : vector<32x1xi32> to vector<32x32xi32>
    %19 = vector.broadcast %17 : vector<1x32xi32> to vector<32x32xi32>
    %20 = arith.cmpi eq, %18, %19 : vector<32x32xi32>
    %21 = vector.broadcast %6 : vector<32x1xi32> to vector<32x32xi32>
    %22 = vector.broadcast %7 : vector<1x32xi32> to vector<32x32xi32>
    %23 = arith.cmpi sge, %21, %22 : vector<32x32xi32>
    %24 = arith.andi %20, %23 : vector<32x32xi1>
    %cst = arith.constant 5.000000e-01 : f32
    %25 = vector.broadcast %cst : f32 to vector<1x32xf32>
    %26 = arith.cmpf ogt, %3, %25 : vector<1x32xf32>
    %27 = vector.broadcast %26 : vector<1x32xi1> to vector<32x32xi1>
    %28 = arith.andi %24, %27 : vector<32x32xi1>
    %c0_8 = arith.constant 0 : index
    %c0_9 = arith.constant 0 : index
    %c0_10 = arith.constant 0 : index
    %29 = vector.load %arg7[%c0_8, %c0_9, %c0_10] : memref<2x1x32xf32, #tpu.memory_space<vmem>>, vector<1x1x32xf32>
    %30 = vector.shape_cast %29 : vector<1x1x32xf32> to vector<1x32xf32>
    %c0_11 = arith.constant 0 : index
    %c0_12 = arith.constant 0 : index
    %c0_13 = arith.constant 0 : index
    %31 = vector.load %arg8[%c0_11, %c0_12, %c0_13] : memref<2x1x32xf32, #tpu.memory_space<vmem>>, vector<1x1x32xf32>
    %32 = vector.shape_cast %31 : vector<1x1x32xf32> to vector<1x32xf32>
    %cst_14 = arith.constant dense<0.000000e+00> : vector<8xf32>
    %33 = vector.multi_reduction <add>, %0, %cst_14 [1] : vector<8x32xf32> to vector<8xf32>
    %34 = vector.shape_cast %33 : vector<8xf32> to vector<8x1xf32>
    %cst_15 = arith.constant 3.200000e+01 : f32
    %35 = vector.broadcast %cst_15 : f32 to vector<8x1xf32>
    %36 = arith.divf %34, %35 : vector<8x1xf32>
    %37 = vector.broadcast %36 : vector<8x1xf32> to vector<8x32xf32>
    %38 = arith.subf %0, %37 : vector<8x32xf32>
    %39 = arith.mulf %38, %38 : vector<8x32xf32>
    %cst_16 = arith.constant dense<0.000000e+00> : vector<8xf32>
    %40 = vector.multi_reduction <add>, %39, %cst_16 [1] : vector<8x32xf32> to vector<8xf32>
    %41 = vector.shape_cast %40 : vector<8xf32> to vector<8x1xf32>
    %cst_17 = arith.constant 3.200000e+01 : f32
    %42 = vector.broadcast %cst_17 : f32 to vector<8x1xf32>
    %43 = arith.divf %41, %42 : vector<8x1xf32>
    %44 = vector.broadcast %36 : vector<8x1xf32> to vector<8x32xf32>
    %45 = arith.subf %0, %44 : vector<8x32xf32>
    %cst_18 = arith.constant 9.99999974E-6 : f32
    %46 = vector.broadcast %cst_18 : f32 to vector<8x1xf32>
    %47 = arith.addf %43, %46 : vector<8x1xf32>
    %48 = math.rsqrt %47 : vector<8x1xf32>
    %49 = vector.broadcast %48 : vector<8x1xf32> to vector<8x32xf32>
    %50 = arith.mulf %45, %49 : vector<8x32xf32>
    %51 = vector.broadcast %30 : vector<1x32xf32> to vector<8x32xf32>
    %52 = arith.mulf %50, %51 : vector<8x32xf32>
    %53 = vector.broadcast %32 : vector<1x32xf32> to vector<8x32xf32>
    %54 = arith.addf %52, %53 : vector<8x32xf32>
    %c0_19 = arith.constant 0 : index
    %c0_20 = arith.constant 0 : index
    %c0_21 = arith.constant 0 : index
    %55 = vector.load %arg3[%c0_19, %c0_20, %c0_21] : memref<2x32x96xf32, #tpu.memory_space<vmem>>, vector<1x32x96xf32>
    %56 = vector.shape_cast %55 : vector<1x32x96xf32> to vector<32x96xf32>
    %cst_22 = arith.constant dense<0.000000e+00> : vector<8x96xf32>
    %57 = tpu.matmul %54, %56, %cst_22 {dimension_numbers = #tpu.dot_dimension_numbers<[1], [0], [0], [1], [0, 0, 1, 1], [], []>} : vector<8x32xf32>, vector<32x96xf32>, vector<8x96xf32> -> vector<8x96xf32>
    %c0_23 = arith.constant 0 : index
    %c0_24 = arith.constant 0 : index
    %c0_25 = arith.constant 0 : index
    %58 = vector.load %arg4[%c0_23, %c0_24, %c0_25] : memref<2x1x96xf32, #tpu.memory_space<vmem>>, vector<1x1x96xf32>
    %59 = vector.shape_cast %58 : vector<1x1x96xf32> to vector<1x96xf32>
    %60 = vector.broadcast %59 : vector<1x96xf32> to vector<8x96xf32>
    %61 = arith.addf %57, %60 : vector<8x96xf32>
    %62 = vector.extract_strided_slice %61 {offsets = [0, 0], sizes = [8, 32], strides = [1, 1]} : vector<8x96xf32> to vector<8x32xf32>
    %cst_26 = arith.constant 0.353553385 : f32
    %63 = vector.broadcast %cst_26 : f32 to vector<8x32xf32>
    %64 = arith.mulf %62, %63 : vector<8x32xf32>
    %65 = vector.extract_strided_slice %61 {offsets = [0, 32], sizes = [8, 32], strides = [1, 1]} : vector<8x96xf32> to vector<8x32xf32>
    %66 = vector.extract_strided_slice %61 {offsets = [0, 64], sizes = [8, 32], strides = [1, 1]} : vector<8x96xf32> to vector<8x32xf32>
    %67 = vector.extract_strided_slice %64 {offsets = [0, 0], sizes = [8, 8], strides = [1, 1]} : vector<8x32xf32> to vector<8x8xf32>
    %68 = vector.extract_strided_slice %64 {offsets = [0, 8], sizes = [8, 8], strides = [1, 1]} : vector<8x32xf32> to vector<8x8xf32>
    %69 = vector.extract_strided_slice %64 {offsets = [0, 16], sizes = [8, 8], strides = [1, 1]} : vector<8x32xf32> to vector<8x8xf32>
    %70 = vector.extract_strided_slice %64 {offsets = [0, 24], sizes = [8, 8], strides = [1, 1]} : vector<8x32xf32> to vector<8x8xf32>
    %71 = tpu.concatenate %67, %68, %69, %70 in 0 : vector<8x8xf32>, vector<8x8xf32>, vector<8x8xf32>, vector<8x8xf32> -> vector<32x8xf32>
    %72 = vector.extract_strided_slice %65 {offsets = [0, 0], sizes = [8, 8], strides = [1, 1]} : vector<8x32xf32> to vector<8x8xf32>
    %73 = vector.extract_strided_slice %65 {offsets = [0, 8], sizes = [8, 8], strides = [1, 1]} : vector<8x32xf32> to vector<8x8xf32>
    %74 = vector.extract_strided_slice %65 {offsets = [0, 16], sizes = [8, 8], strides = [1, 1]} : vector<8x32xf32> to vector<8x8xf32>
    %75 = vector.extract_strided_slice %65 {offsets = [0, 24], sizes = [8, 8], strides = [1, 1]} : vector<8x32xf32> to vector<8x8xf32>
    %76 = tpu.concatenate %72, %73, %74, %75 in 0 : vector<8x8xf32>, vector<8x8xf32>, vector<8x8xf32>, vector<8x8xf32> -> vector<32x8xf32>
    %77 = vector.extract_strided_slice %66 {offsets = [0, 0], sizes = [8, 8], strides = [1, 1]} : vector<8x32xf32> to vector<8x8xf32>
    %78 = vector.extract_strided_slice %66 {offsets = [0, 8], sizes = [8, 8], strides = [1, 1]} : vector<8x32xf32> to vector<8x8xf32>
    %79 = vector.extract_strided_slice %66 {offsets = [0, 16], sizes = [8, 8], strides = [1, 1]} : vector<8x32xf32> to vector<8x8xf32>
    %80 = vector.extract_strided_slice %66 {offsets = [0, 24], sizes = [8, 8], strides = [1, 1]} : vector<8x32xf32> to vector<8x8xf32>
    %81 = tpu.concatenate %77, %78, %79, %80 in 0 : vector<8x8xf32>, vector<8x8xf32>, vector<8x8xf32>, vector<8x8xf32> -> vector<32x8xf32>
    %cst_27 = arith.constant dense<0.000000e+00> : vector<32x32xf32>
    %82 = tpu.matmul %71, %76, %cst_27 {dimension_numbers = #tpu.dot_dimension_numbers<[1], [1], [0], [0], [0, 0, 1, 0], [], []>} : vector<32x8xf32>, vector<32x8xf32>, vector<32x32xf32> -> vector<32x32xf32>
    %cst_28 = arith.constant -1.000000e+09 : f32
    %83 = vector.broadcast %cst_28 : f32 to vector<32x32xf32>
    %84 = arith.select %28, %82, %83 : vector<32x32xi1>, vector<32x32xf32>
    %cst_29 = arith.constant dense<0xFF800000> : vector<32xf32>
    %85 = vector.multi_reduction <maximumf>, %84, %cst_29 [1] : vector<32x32xf32> to vector<32xf32>
    %86 = vector.shape_cast %85 : vector<32xf32> to vector<32x1xf32>
    %87 = vector.broadcast %86 : vector<32x1xf32> to vector<32x32xf32>
    %88 = arith.subf %84, %87 : vector<32x32xf32>
    %89 = math.exp %88 : vector<32x32xf32>
    %cst_30 = arith.constant dense<0.000000e+00> : vector<32xf32>
    %90 = vector.multi_reduction <add>, %89, %cst_30 [1] : vector<32x32xf32> to vector<32xf32>
    %91 = vector.shape_cast %90 : vector<32xf32> to vector<32x1xf32>
    %92 = tpu.reciprocal %91 {approx = true} : vector<32x1xf32> -> vector<32x1xf32>
    %93 = vector.broadcast %92 : vector<32x1xf32> to vector<32x32xf32>
    %94 = arith.mulf %89, %93 : vector<32x32xf32>
    %cst_31 = arith.constant dense<0.000000e+00> : vector<32x8xf32>
    %95 = tpu.matmul %94, %81, %cst_31 {dimension_numbers = #tpu.dot_dimension_numbers<[1], [0], [0], [1], [0, 0, 1, 1], [], []>} : vector<32x32xf32>, vector<32x8xf32>, vector<32x8xf32> -> vector<32x8xf32>
    %96 = vector.extract_strided_slice %95 {offsets = [0, 0], sizes = [8, 8], strides = [1, 1]} : vector<32x8xf32> to vector<8x8xf32>
    %97 = vector.extract_strided_slice %95 {offsets = [8, 0], sizes = [8, 8], strides = [1, 1]} : vector<32x8xf32> to vector<8x8xf32>
    %98 = vector.extract_strided_slice %95 {offsets = [16, 0], sizes = [8, 8], strides = [1, 1]} : vector<32x8xf32> to vector<8x8xf32>
    %99 = vector.extract_strided_slice %95 {offsets = [24, 0], sizes = [8, 8], strides = [1, 1]} : vector<32x8xf32> to vector<8x8xf32>
    %100 = tpu.concatenate %96, %97, %98, %99 in 1 : vector<8x8xf32>, vector<8x8xf32>, vector<8x8xf32>, vector<8x8xf32> -> vector<8x32xf32>
    %c0_32 = arith.constant 0 : index
    %c0_33 = arith.constant 0 : index
    %c0_34 = arith.constant 0 : index
    %101 = vector.load %arg5[%c0_32, %c0_33, %c0_34] : memref<2x32x32xf32, #tpu.memory_space<vmem>>, vector<1x32x32xf32>
    %102 = vector.shape_cast %101 : vector<1x32x32xf32> to vector<32x32xf32>
    %cst_35 = arith.constant dense<0.000000e+00> : vector<8x32xf32>
    %103 = tpu.matmul %100, %102, %cst_35 {dimension_numbers = #tpu.dot_dimension_numbers<[1], [0], [0], [1], [0, 0, 1, 1], [], []>} : vector<8x32xf32>, vector<32x32xf32>, vector<8x32xf32> -> vector<8x32xf32>
    %104 = arith.addf %0, %103 : vector<8x32xf32>
    %c0_36 = arith.constant 0 : index
    %c0_37 = arith.constant 0 : index
    %c0_38 = arith.constant 0 : index
    %105 = vector.load %arg6[%c0_36, %c0_37, %c0_38] : memref<2x1x32xf32, #tpu.memory_space<vmem>>, vector<1x1x32xf32>
    %106 = vector.shape_cast %105 : vector<1x1x32xf32> to vector<1x32xf32>
    %107 = vector.broadcast %106 : vector<1x32xf32> to vector<8x32xf32>
    %108 = arith.addf %104, %107 : vector<8x32xf32>
    %c0_39 = arith.constant 0 : index
    %c0_40 = arith.constant 0 : index
    %c0_41 = arith.constant 0 : index
    %109 = vector.load %arg9[%c0_39, %c0_40, %c0_41] : memref<2x1x32xf32, #tpu.memory_space<vmem>>, vector<1x1x32xf32>
    %110 = vector.shape_cast %109 : vector<1x1x32xf32> to vector<1x32xf32>
    %c0_42 = arith.constant 0 : index
    %c0_43 = arith.constant 0 : index
    %c0_44 = arith.constant 0 : index
    %111 = vector.load %arg10[%c0_42, %c0_43, %c0_44] : memref<2x1x32xf32, #tpu.memory_space<vmem>>, vector<1x1x32xf32>
    %112 = vector.shape_cast %111 : vector<1x1x32xf32> to vector<1x32xf32>
    %cst_45 = arith.constant dense<0.000000e+00> : vector<8xf32>
    %113 = vector.multi_reduction <add>, %108, %cst_45 [1] : vector<8x32xf32> to vector<8xf32>
    %114 = vector.shape_cast %113 : vector<8xf32> to vector<8x1xf32>
    %cst_46 = arith.constant 3.200000e+01 : f32
    %115 = vector.broadcast %cst_46 : f32 to vector<8x1xf32>
    %116 = arith.divf %114, %115 : vector<8x1xf32>
    %117 = vector.broadcast %116 : vector<8x1xf32> to vector<8x32xf32>
    %118 = arith.subf %108, %117 : vector<8x32xf32>
    %119 = arith.mulf %118, %118 : vector<8x32xf32>
    %cst_47 = arith.constant dense<0.000000e+00> : vector<8xf32>
    %120 = vector.multi_reduction <add>, %119, %cst_47 [1] : vector<8x32xf32> to vector<8xf32>
    %121 = vector.shape_cast %120 : vector<8xf32> to vector<8x1xf32>
    %cst_48 = arith.constant 3.200000e+01 : f32
    %122 = vector.broadcast %cst_48 : f32 to vector<8x1xf32>
    %123 = arith.divf %121, %122 : vector<8x1xf32>
    %124 = vector.broadcast %116 : vector<8x1xf32> to vector<8x32xf32>
    %125 = arith.subf %108, %124 : vector<8x32xf32>
    %cst_49 = arith.constant 9.99999974E-6 : f32
    %126 = vector.broadcast %cst_49 : f32 to vector<8x1xf32>
    %127 = arith.addf %123, %126 : vector<8x1xf32>
    %128 = math.rsqrt %127 : vector<8x1xf32>
    %129 = vector.broadcast %128 : vector<8x1xf32> to vector<8x32xf32>
    %130 = arith.mulf %125, %129 : vector<8x32xf32>
    %131 = vector.broadcast %110 : vector<1x32xf32> to vector<8x32xf32>
    %132 = arith.mulf %130, %131 : vector<8x32xf32>
    %133 = vector.broadcast %112 : vector<1x32xf32> to vector<8x32xf32>
    %134 = arith.addf %132, %133 : vector<8x32xf32>
    %c0_50 = arith.constant 0 : index
    %c0_51 = arith.constant 0 : index
    %c0_52 = arith.constant 0 : index
    %135 = vector.load %arg11[%c0_50, %c0_51, %c0_52] : memref<2x32x128xf32, #tpu.memory_space<vmem>>, vector<1x32x128xf32>
    %136 = vector.shape_cast %135 : vector<1x32x128xf32> to vector<32x128xf32>
    %cst_53 = arith.constant dense<0.000000e+00> : vector<8x128xf32>
    %137 = tpu.matmul %134, %136, %cst_53 {dimension_numbers = #tpu.dot_dimension_numbers<[1], [0], [0], [1], [0, 0, 1, 1], [], []>} : vector<8x32xf32>, vector<32x128xf32>, vector<8x128xf32> -> vector<8x128xf32>
    %c0_54 = arith.constant 0 : index
    %c0_55 = arith.constant 0 : index
    %c0_56 = arith.constant 0 : index
    %138 = vector.load %arg12[%c0_54, %c0_55, %c0_56] : memref<2x1x128xf32, #tpu.memory_space<vmem>>, vector<1x1x128xf32>
    %139 = vector.shape_cast %138 : vector<1x1x128xf32> to vector<1x128xf32>
    %140 = vector.broadcast %139 : vector<1x128xf32> to vector<8x128xf32>
    %141 = arith.addf %137, %140 : vector<8x128xf32>
    %cst_57 = arith.constant 5.000000e-01 : f32
    %142 = vector.broadcast %cst_57 : f32 to vector<8x128xf32>
    %143 = arith.mulf %142, %141 : vector<8x128xf32>
    %cst_58 = arith.constant 4.471500e-02 : f32
    %144 = vector.broadcast %cst_58 : f32 to vector<8x128xf32>
    %145 = arith.mulf %144, %141 : vector<8x128xf32>
    %146 = arith.mulf %145, %141 : vector<8x128xf32>
    %147 = arith.mulf %146, %141 : vector<8x128xf32>
    %148 = arith.addf %141, %147 : vector<8x128xf32>
    %cst_59 = arith.constant 0.797884583 : f32
    %149 = vector.broadcast %cst_59 : f32 to vector<8x128xf32>
    %150 = arith.mulf %149, %148 : vector<8x128xf32>
    %151 = math.tanh %150 : vector<8x128xf32>
    %cst_60 = arith.constant 1.000000e+00 : f32
    %152 = vector.broadcast %cst_60 : f32 to vector<8x128xf32>
    %153 = arith.addf %152, %151 : vector<8x128xf32>
    %154 = arith.mulf %143, %153 : vector<8x128xf32>
    %c0_61 = arith.constant 0 : index
    %c0_62 = arith.constant 0 : index
    %c0_63 = arith.constant 0 : index
    %155 = vector.load %arg13[%c0_61, %c0_62, %c0_63] : memref<2x128x32xf32, #tpu.memory_space<vmem>>, vector<1x128x32xf32>
    %156 = vector.shape_cast %155 : vector<1x128x32xf32> to vector<128x32xf32>
    %cst_64 = arith.constant dense<0.000000e+00> : vector<8x32xf32>
    %157 = tpu.matmul %154, %156, %cst_64 {dimension_numbers = #tpu.dot_dimension_numbers<[1], [0], [0], [1], [0, 0, 1, 1], [], []>} : vector<8x128xf32>, vector<128x32xf32>, vector<8x32xf32> -> vector<8x32xf32>
    %158 = arith.addf %108, %157 : vector<8x32xf32>
    %c0_65 = arith.constant 0 : index
    %c0_66 = arith.constant 0 : index
    %c0_67 = arith.constant 0 : index
    %159 = vector.load %arg14[%c0_65, %c0_66, %c0_67] : memref<2x1x32xf32, #tpu.memory_space<vmem>>, vector<1x1x32xf32>
    %160 = vector.shape_cast %159 : vector<1x1x32xf32> to vector<1x32xf32>
    %161 = vector.broadcast %160 : vector<1x32xf32> to vector<8x32xf32>
    %162 = arith.addf %158, %161 : vector<8x32xf32>
    %c1 = arith.constant 1 : index
    %c0_68 = arith.constant 0 : index
    %c0_69 = arith.constant 0 : index
    %163 = vector.load %arg7[%c1, %c0_68, %c0_69] : memref<2x1x32xf32, #tpu.memory_space<vmem>>, vector<1x1x32xf32>
    %164 = vector.shape_cast %163 : vector<1x1x32xf32> to vector<1x32xf32>
    %c1_70 = arith.constant 1 : index
    %c0_71 = arith.constant 0 : index
    %c0_72 = arith.constant 0 : index
    %165 = vector.load %arg8[%c1_70, %c0_71, %c0_72] : memref<2x1x32xf32, #tpu.memory_space<vmem>>, vector<1x1x32xf32>
    %166 = vector.shape_cast %165 : vector<1x1x32xf32> to vector<1x32xf32>
    %cst_73 = arith.constant dense<0.000000e+00> : vector<8xf32>
    %167 = vector.multi_reduction <add>, %162, %cst_73 [1] : vector<8x32xf32> to vector<8xf32>
    %168 = vector.shape_cast %167 : vector<8xf32> to vector<8x1xf32>
    %cst_74 = arith.constant 3.200000e+01 : f32
    %169 = vector.broadcast %cst_74 : f32 to vector<8x1xf32>
    %170 = arith.divf %168, %169 : vector<8x1xf32>
    %171 = vector.broadcast %170 : vector<8x1xf32> to vector<8x32xf32>
    %172 = arith.subf %162, %171 : vector<8x32xf32>
    %173 = arith.mulf %172, %172 : vector<8x32xf32>
    %cst_75 = arith.constant dense<0.000000e+00> : vector<8xf32>
    %174 = vector.multi_reduction <add>, %173, %cst_75 [1] : vector<8x32xf32> to vector<8xf32>
    %175 = vector.shape_cast %174 : vector<8xf32> to vector<8x1xf32>
    %cst_76 = arith.constant 3.200000e+01 : f32
    %176 = vector.broadcast %cst_76 : f32 to vector<8x1xf32>
    %177 = arith.divf %175, %176 : vector<8x1xf32>
    %178 = vector.broadcast %170 : vector<8x1xf32> to vector<8x32xf32>
    %179 = arith.subf %162, %178 : vector<8x32xf32>
    %cst_77 = arith.constant 9.99999974E-6 : f32
    %180 = vector.broadcast %cst_77 : f32 to vector<8x1xf32>
    %181 = arith.addf %177, %180 : vector<8x1xf32>
    %182 = math.rsqrt %181 : vector<8x1xf32>
    %183 = vector.broadcast %182 : vector<8x1xf32> to vector<8x32xf32>
    %184 = arith.mulf %179, %183 : vector<8x32xf32>
    %185 = vector.broadcast %164 : vector<1x32xf32> to vector<8x32xf32>
    %186 = arith.mulf %184, %185 : vector<8x32xf32>
    %187 = vector.broadcast %166 : vector<1x32xf32> to vector<8x32xf32>
    %188 = arith.addf %186, %187 : vector<8x32xf32>
    %c1_78 = arith.constant 1 : index
    %c0_79 = arith.constant 0 : index
    %c0_80 = arith.constant 0 : index
    %189 = vector.load %arg3[%c1_78, %c0_79, %c0_80] : memref<2x32x96xf32, #tpu.memory_space<vmem>>, vector<1x32x96xf32>
    %190 = vector.shape_cast %189 : vector<1x32x96xf32> to vector<32x96xf32>
    %cst_81 = arith.constant dense<0.000000e+00> : vector<8x96xf32>
    %191 = tpu.matmul %188, %190, %cst_81 {dimension_numbers = #tpu.dot_dimension_numbers<[1], [0], [0], [1], [0, 0, 1, 1], [], []>} : vector<8x32xf32>, vector<32x96xf32>, vector<8x96xf32> -> vector<8x96xf32>
    %c1_82 = arith.constant 1 : index
    %c0_83 = arith.constant 0 : index
    %c0_84 = arith.constant 0 : index
    %192 = vector.load %arg4[%c1_82, %c0_83, %c0_84] : memref<2x1x96xf32, #tpu.memory_space<vmem>>, vector<1x1x96xf32>
    %193 = vector.shape_cast %192 : vector<1x1x96xf32> to vector<1x96xf32>
    %194 = vector.broadcast %193 : vector<1x96xf32> to vector<8x96xf32>
    %195 = arith.addf %191, %194 : vector<8x96xf32>
    %196 = vector.extract_strided_slice %195 {offsets = [0, 0], sizes = [8, 32], strides = [1, 1]} : vector<8x96xf32> to vector<8x32xf32>
    %cst_85 = arith.constant 0.353553385 : f32
    %197 = vector.broadcast %cst_85 : f32 to vector<8x32xf32>
    %198 = arith.mulf %196, %197 : vector<8x32xf32>
    %199 = vector.extract_strided_slice %195 {offsets = [0, 32], sizes = [8, 32], strides = [1, 1]} : vector<8x96xf32> to vector<8x32xf32>
    %200 = vector.extract_strided_slice %195 {offsets = [0, 64], sizes = [8, 32], strides = [1, 1]} : vector<8x96xf32> to vector<8x32xf32>
    %201 = vector.extract_strided_slice %198 {offsets = [0, 0], sizes = [8, 8], strides = [1, 1]} : vector<8x32xf32> to vector<8x8xf32>
    %202 = vector.extract_strided_slice %198 {offsets = [0, 8], sizes = [8, 8], strides = [1, 1]} : vector<8x32xf32> to vector<8x8xf32>
    %203 = vector.extract_strided_slice %198 {offsets = [0, 16], sizes = [8, 8], strides = [1, 1]} : vector<8x32xf32> to vector<8x8xf32>
    %204 = vector.extract_strided_slice %198 {offsets = [0, 24], sizes = [8, 8], strides = [1, 1]} : vector<8x32xf32> to vector<8x8xf32>
    %205 = tpu.concatenate %201, %202, %203, %204 in 0 : vector<8x8xf32>, vector<8x8xf32>, vector<8x8xf32>, vector<8x8xf32> -> vector<32x8xf32>
    %206 = vector.extract_strided_slice %199 {offsets = [0, 0], sizes = [8, 8], strides = [1, 1]} : vector<8x32xf32> to vector<8x8xf32>
    %207 = vector.extract_strided_slice %199 {offsets = [0, 8], sizes = [8, 8], strides = [1, 1]} : vector<8x32xf32> to vector<8x8xf32>
    %208 = vector.extract_strided_slice %199 {offsets = [0, 16], sizes = [8, 8], strides = [1, 1]} : vector<8x32xf32> to vector<8x8xf32>
    %209 = vector.extract_strided_slice %199 {offsets = [0, 24], sizes = [8, 8], strides = [1, 1]} : vector<8x32xf32> to vector<8x8xf32>
    %210 = tpu.concatenate %206, %207, %208, %209 in 0 : vector<8x8xf32>, vector<8x8xf32>, vector<8x8xf32>, vector<8x8xf32> -> vector<32x8xf32>
    %211 = vector.extract_strided_slice %200 {offsets = [0, 0], sizes = [8, 8], strides = [1, 1]} : vector<8x32xf32> to vector<8x8xf32>
    %212 = vector.extract_strided_slice %200 {offsets = [0, 8], sizes = [8, 8], strides = [1, 1]} : vector<8x32xf32> to vector<8x8xf32>
    %213 = vector.extract_strided_slice %200 {offsets = [0, 16], sizes = [8, 8], strides = [1, 1]} : vector<8x32xf32> to vector<8x8xf32>
    %214 = vector.extract_strided_slice %200 {offsets = [0, 24], sizes = [8, 8], strides = [1, 1]} : vector<8x32xf32> to vector<8x8xf32>
    %215 = tpu.concatenate %211, %212, %213, %214 in 0 : vector<8x8xf32>, vector<8x8xf32>, vector<8x8xf32>, vector<8x8xf32> -> vector<32x8xf32>
    %cst_86 = arith.constant dense<0.000000e+00> : vector<32x32xf32>
    %216 = tpu.matmul %205, %210, %cst_86 {dimension_numbers = #tpu.dot_dimension_numbers<[1], [1], [0], [0], [0, 0, 1, 0], [], []>} : vector<32x8xf32>, vector<32x8xf32>, vector<32x32xf32> -> vector<32x32xf32>
    %cst_87 = arith.constant -1.000000e+09 : f32
    %217 = vector.broadcast %cst_87 : f32 to vector<32x32xf32>
    %218 = arith.select %28, %216, %217 : vector<32x32xi1>, vector<32x32xf32>
    %cst_88 = arith.constant dense<0xFF800000> : vector<32xf32>
    %219 = vector.multi_reduction <maximumf>, %218, %cst_88 [1] : vector<32x32xf32> to vector<32xf32>
    %220 = vector.shape_cast %219 : vector<32xf32> to vector<32x1xf32>
    %221 = vector.broadcast %220 : vector<32x1xf32> to vector<32x32xf32>
    %222 = arith.subf %218, %221 : vector<32x32xf32>
    %223 = math.exp %222 : vector<32x32xf32>
    %cst_89 = arith.constant dense<0.000000e+00> : vector<32xf32>
    %224 = vector.multi_reduction <add>, %223, %cst_89 [1] : vector<32x32xf32> to vector<32xf32>
    %225 = vector.shape_cast %224 : vector<32xf32> to vector<32x1xf32>
    %226 = tpu.reciprocal %225 {approx = true} : vector<32x1xf32> -> vector<32x1xf32>
    %227 = vector.broadcast %226 : vector<32x1xf32> to vector<32x32xf32>
    %228 = arith.mulf %223, %227 : vector<32x32xf32>
    %cst_90 = arith.constant dense<0.000000e+00> : vector<32x8xf32>
    %229 = tpu.matmul %228, %215, %cst_90 {dimension_numbers = #tpu.dot_dimension_numbers<[1], [0], [0], [1], [0, 0, 1, 1], [], []>} : vector<32x32xf32>, vector<32x8xf32>, vector<32x8xf32> -> vector<32x8xf32>
    %230 = vector.extract_strided_slice %229 {offsets = [0, 0], sizes = [8, 8], strides = [1, 1]} : vector<32x8xf32> to vector<8x8xf32>
    %231 = vector.extract_strided_slice %229 {offsets = [8, 0], sizes = [8, 8], strides = [1, 1]} : vector<32x8xf32> to vector<8x8xf32>
    %232 = vector.extract_strided_slice %229 {offsets = [16, 0], sizes = [8, 8], strides = [1, 1]} : vector<32x8xf32> to vector<8x8xf32>
    %233 = vector.extract_strided_slice %229 {offsets = [24, 0], sizes = [8, 8], strides = [1, 1]} : vector<32x8xf32> to vector<8x8xf32>
    %234 = tpu.concatenate %230, %231, %232, %233 in 1 : vector<8x8xf32>, vector<8x8xf32>, vector<8x8xf32>, vector<8x8xf32> -> vector<8x32xf32>
    %c1_91 = arith.constant 1 : index
    %c0_92 = arith.constant 0 : index
    %c0_93 = arith.constant 0 : index
    %235 = vector.load %arg5[%c1_91, %c0_92, %c0_93] : memref<2x32x32xf32, #tpu.memory_space<vmem>>, vector<1x32x32xf32>
    %236 = vector.shape_cast %235 : vector<1x32x32xf32> to vector<32x32xf32>
    %cst_94 = arith.constant dense<0.000000e+00> : vector<8x32xf32>
    %237 = tpu.matmul %234, %236, %cst_94 {dimension_numbers = #tpu.dot_dimension_numbers<[1], [0], [0], [1], [0, 0, 1, 1], [], []>} : vector<8x32xf32>, vector<32x32xf32>, vector<8x32xf32> -> vector<8x32xf32>
    %238 = arith.addf %162, %237 : vector<8x32xf32>
    %c1_95 = arith.constant 1 : index
    %c0_96 = arith.constant 0 : index
    %c0_97 = arith.constant 0 : index
    %239 = vector.load %arg6[%c1_95, %c0_96, %c0_97] : memref<2x1x32xf32, #tpu.memory_space<vmem>>, vector<1x1x32xf32>
    %240 = vector.shape_cast %239 : vector<1x1x32xf32> to vector<1x32xf32>
    %241 = vector.broadcast %240 : vector<1x32xf32> to vector<8x32xf32>
    %242 = arith.addf %238, %241 : vector<8x32xf32>
    %c1_98 = arith.constant 1 : index
    %c0_99 = arith.constant 0 : index
    %c0_100 = arith.constant 0 : index
    %243 = vector.load %arg9[%c1_98, %c0_99, %c0_100] : memref<2x1x32xf32, #tpu.memory_space<vmem>>, vector<1x1x32xf32>
    %244 = vector.shape_cast %243 : vector<1x1x32xf32> to vector<1x32xf32>
    %c1_101 = arith.constant 1 : index
    %c0_102 = arith.constant 0 : index
    %c0_103 = arith.constant 0 : index
    %245 = vector.load %arg10[%c1_101, %c0_102, %c0_103] : memref<2x1x32xf32, #tpu.memory_space<vmem>>, vector<1x1x32xf32>
    %246 = vector.shape_cast %245 : vector<1x1x32xf32> to vector<1x32xf32>
    %cst_104 = arith.constant dense<0.000000e+00> : vector<8xf32>
    %247 = vector.multi_reduction <add>, %242, %cst_104 [1] : vector<8x32xf32> to vector<8xf32>
    %248 = vector.shape_cast %247 : vector<8xf32> to vector<8x1xf32>
    %cst_105 = arith.constant 3.200000e+01 : f32
    %249 = vector.broadcast %cst_105 : f32 to vector<8x1xf32>
    %250 = arith.divf %248, %249 : vector<8x1xf32>
    %251 = vector.broadcast %250 : vector<8x1xf32> to vector<8x32xf32>
    %252 = arith.subf %242, %251 : vector<8x32xf32>
    %253 = arith.mulf %252, %252 : vector<8x32xf32>
    %cst_106 = arith.constant dense<0.000000e+00> : vector<8xf32>
    %254 = vector.multi_reduction <add>, %253, %cst_106 [1] : vector<8x32xf32> to vector<8xf32>
    %255 = vector.shape_cast %254 : vector<8xf32> to vector<8x1xf32>
    %cst_107 = arith.constant 3.200000e+01 : f32
    %256 = vector.broadcast %cst_107 : f32 to vector<8x1xf32>
    %257 = arith.divf %255, %256 : vector<8x1xf32>
    %258 = vector.broadcast %250 : vector<8x1xf32> to vector<8x32xf32>
    %259 = arith.subf %242, %258 : vector<8x32xf32>
    %cst_108 = arith.constant 9.99999974E-6 : f32
    %260 = vector.broadcast %cst_108 : f32 to vector<8x1xf32>
    %261 = arith.addf %257, %260 : vector<8x1xf32>
    %262 = math.rsqrt %261 : vector<8x1xf32>
    %263 = vector.broadcast %262 : vector<8x1xf32> to vector<8x32xf32>
    %264 = arith.mulf %259, %263 : vector<8x32xf32>
    %265 = vector.broadcast %244 : vector<1x32xf32> to vector<8x32xf32>
    %266 = arith.mulf %264, %265 : vector<8x32xf32>
    %267 = vector.broadcast %246 : vector<1x32xf32> to vector<8x32xf32>
    %268 = arith.addf %266, %267 : vector<8x32xf32>
    %c1_109 = arith.constant 1 : index
    %c0_110 = arith.constant 0 : index
    %c0_111 = arith.constant 0 : index
    %269 = vector.load %arg11[%c1_109, %c0_110, %c0_111] : memref<2x32x128xf32, #tpu.memory_space<vmem>>, vector<1x32x128xf32>
    %270 = vector.shape_cast %269 : vector<1x32x128xf32> to vector<32x128xf32>
    %cst_112 = arith.constant dense<0.000000e+00> : vector<8x128xf32>
    %271 = tpu.matmul %268, %270, %cst_112 {dimension_numbers = #tpu.dot_dimension_numbers<[1], [0], [0], [1], [0, 0, 1, 1], [], []>} : vector<8x32xf32>, vector<32x128xf32>, vector<8x128xf32> -> vector<8x128xf32>
    %c1_113 = arith.constant 1 : index
    %c0_114 = arith.constant 0 : index
    %c0_115 = arith.constant 0 : index
    %272 = vector.load %arg12[%c1_113, %c0_114, %c0_115] : memref<2x1x128xf32, #tpu.memory_space<vmem>>, vector<1x1x128xf32>
    %273 = vector.shape_cast %272 : vector<1x1x128xf32> to vector<1x128xf32>
    %274 = vector.broadcast %273 : vector<1x128xf32> to vector<8x128xf32>
    %275 = arith.addf %271, %274 : vector<8x128xf32>
    %cst_116 = arith.constant 5.000000e-01 : f32
    %276 = vector.broadcast %cst_116 : f32 to vector<8x128xf32>
    %277 = arith.mulf %276, %275 : vector<8x128xf32>
    %cst_117 = arith.constant 4.471500e-02 : f32
    %278 = vector.broadcast %cst_117 : f32 to vector<8x128xf32>
    %279 = arith.mulf %278, %275 : vector<8x128xf32>
    %280 = arith.mulf %279, %275 : vector<8x128xf32>
    %281 = arith.mulf %280, %275 : vector<8x128xf32>
    %282 = arith.addf %275, %281 : vector<8x128xf32>
    %cst_118 = arith.constant 0.797884583 : f32
    %283 = vector.broadcast %cst_118 : f32 to vector<8x128xf32>
    %284 = arith.mulf %283, %282 : vector<8x128xf32>
    %285 = math.tanh %284 : vector<8x128xf32>
    %cst_119 = arith.constant 1.000000e+00 : f32
    %286 = vector.broadcast %cst_119 : f32 to vector<8x128xf32>
    %287 = arith.addf %286, %285 : vector<8x128xf32>
    %288 = arith.mulf %277, %287 : vector<8x128xf32>
    %c1_120 = arith.constant 1 : index
    %c0_121 = arith.constant 0 : index
    %c0_122 = arith.constant 0 : index
    %289 = vector.load %arg13[%c1_120, %c0_121, %c0_122] : memref<2x128x32xf32, #tpu.memory_space<vmem>>, vector<1x128x32xf32>
    %290 = vector.shape_cast %289 : vector<1x128x32xf32> to vector<128x32xf32>
    %cst_123 = arith.constant dense<0.000000e+00> : vector<8x32xf32>
    %291 = tpu.matmul %288, %290, %cst_123 {dimension_numbers = #tpu.dot_dimension_numbers<[1], [0], [0], [1], [0, 0, 1, 1], [], []>} : vector<8x128xf32>, vector<128x32xf32>, vector<8x32xf32> -> vector<8x32xf32>
    %292 = arith.addf %242, %291 : vector<8x32xf32>
    %c1_124 = arith.constant 1 : index
    %c0_125 = arith.constant 0 : index
    %c0_126 = arith.constant 0 : index
    %293 = vector.load %arg14[%c1_124, %c0_125, %c0_126] : memref<2x1x32xf32, #tpu.memory_space<vmem>>, vector<1x1x32xf32>
    %294 = vector.shape_cast %293 : vector<1x1x32xf32> to vector<1x32xf32>
    %295 = vector.broadcast %294 : vector<1x32xf32> to vector<8x32xf32>
    %296 = arith.addf %292, %295 : vector<8x32xf32>
    %c0_127 = arith.constant 0 : index
    %c0_128 = arith.constant 0 : index
    %297 = vector.load %arg15[%c0_127, %c0_128] : memref<1x32xf32, #tpu.memory_space<vmem>>, vector<1x32xf32>
    %c0_129 = arith.constant 0 : index
    %c0_130 = arith.constant 0 : index
    %298 = vector.load %arg16[%c0_129, %c0_130] : memref<1x32xf32, #tpu.memory_space<vmem>>, vector<1x32xf32>
    %cst_131 = arith.constant dense<0.000000e+00> : vector<8xf32>
    %299 = vector.multi_reduction <add>, %296, %cst_131 [1] : vector<8x32xf32> to vector<8xf32>
    %300 = vector.shape_cast %299 : vector<8xf32> to vector<8x1xf32>
    %cst_132 = arith.constant 3.200000e+01 : f32
    %301 = vector.broadcast %cst_132 : f32 to vector<8x1xf32>
    %302 = arith.divf %300, %301 : vector<8x1xf32>
    %303 = vector.broadcast %302 : vector<8x1xf32> to vector<8x32xf32>
    %304 = arith.subf %296, %303 : vector<8x32xf32>
    %305 = arith.mulf %304, %304 : vector<8x32xf32>
    %cst_133 = arith.constant dense<0.000000e+00> : vector<8xf32>
    %306 = vector.multi_reduction <add>, %305, %cst_133 [1] : vector<8x32xf32> to vector<8xf32>
    %307 = vector.shape_cast %306 : vector<8xf32> to vector<8x1xf32>
    %cst_134 = arith.constant 3.200000e+01 : f32
    %308 = vector.broadcast %cst_134 : f32 to vector<8x1xf32>
    %309 = arith.divf %307, %308 : vector<8x1xf32>
    %310 = vector.broadcast %302 : vector<8x1xf32> to vector<8x32xf32>
    %311 = arith.subf %296, %310 : vector<8x32xf32>
    %cst_135 = arith.constant 9.99999974E-6 : f32
    %312 = vector.broadcast %cst_135 : f32 to vector<8x1xf32>
    %313 = arith.addf %309, %312 : vector<8x1xf32>
    %314 = math.rsqrt %313 : vector<8x1xf32>
    %315 = vector.broadcast %314 : vector<8x1xf32> to vector<8x32xf32>
    %316 = arith.mulf %311, %315 : vector<8x32xf32>
    %317 = vector.broadcast %297 : vector<1x32xf32> to vector<8x32xf32>
    %318 = arith.mulf %316, %317 : vector<8x32xf32>
    %319 = vector.broadcast %298 : vector<1x32xf32> to vector<8x32xf32>
    %320 = arith.addf %318, %319 : vector<8x32xf32>
    %c0_136 = arith.constant 0 : index
    %c0_137 = arith.constant 0 : index
    %321 = vector.load %arg17[%c0_136, %c0_137] : memref<128x32xf32, #tpu.memory_space<vmem>>, vector<128x32xf32>
    %cst_138 = arith.constant dense<0.000000e+00> : vector<8x128xf32>
    %322 = tpu.matmul %320, %321, %cst_138 {dimension_numbers = #tpu.dot_dimension_numbers<[1], [1], [0], [0], [0, 0, 1, 0], [], []>} : vector<8x32xf32>, vector<128x32xf32>, vector<8x128xf32> -> vector<8x128xf32>
    %c0_139 = arith.constant 0 : index
    %c0_140 = arith.constant 0 : index
    %323 = vector.load %arg18[%c0_139, %c0_140] : memref<8x128xf32, #tpu.memory_space<vmem>>, vector<8x128xf32>
    tpu.vector_store %arg18[%c0_139, %c0_140], %322 {strides = array<i32>} : memref<8x128xf32, #tpu.memory_space<vmem>>, vector<8x128xf32>,
    return
  }
  func.func @transform_0(%arg0: i32) -> (i32, i32, i32) {
    %c0_i32 = arith.constant 0 : i32
    %c0_i32_0 = arith.constant 0 : i32
    %c0_i32_1 = arith.constant 0 : i32
    return %arg0, %c0_i32, %c0_i32_0 : i32, i32, i32
  }
  func.func @transform_1(%arg0: i32) -> (i32, i32) {
    %c0_i32 = arith.constant 0 : i32
    %c0_i32_0 = arith.constant 0 : i32
    return %arg0, %c0_i32 : i32, i32
  }
  func.func @transform_2(%arg0: i32) -> (i32, i32, i32) {
    %c0_i32 = arith.constant 0 : i32
    %c0_i32_0 = arith.constant 0 : i32
    %c0_i32_1 = arith.constant 0 : i32
    %c0_i32_2 = arith.constant 0 : i32
    return %c0_i32, %c0_i32_0, %c0_i32_1 : i32, i32, i32
  }
  func.func @transform_3(%arg0: i32) -> (i32, i32, i32) {
    %c0_i32 = arith.constant 0 : i32
    %c0_i32_0 = arith.constant 0 : i32
    %c0_i32_1 = arith.constant 0 : i32
    %c0_i32_2 = arith.constant 0 : i32
    return %c0_i32, %c0_i32_0, %c0_i32_1 : i32, i32, i32
  }
  func.func @transform_4(%arg0: i32) -> (i32, i32, i32) {
    %c0_i32 = arith.constant 0 : i32
    %c0_i32_0 = arith.constant 0 : i32
    %c0_i32_1 = arith.constant 0 : i32
    %c0_i32_2 = arith.constant 0 : i32
    return %c0_i32, %c0_i32_0, %c0_i32_1 : i32, i32, i32
  }
  func.func @transform_5(%arg0: i32) -> (i32, i32, i32) {
    %c0_i32 = arith.constant 0 : i32
    %c0_i32_0 = arith.constant 0 : i32
    %c0_i32_1 = arith.constant 0 : i32
    %c0_i32_2 = arith.constant 0 : i32
    return %c0_i32, %c0_i32_0, %c0_i32_1 : i32, i32, i32
  }
  func.func @transform_6(%arg0: i32) -> (i32, i32, i32) {
    %c0_i32 = arith.constant 0 : i32
    %c0_i32_0 = arith.constant 0 : i32
    %c0_i32_1 = arith.constant 0 : i32
    %c0_i32_2 = arith.constant 0 : i32
    return %c0_i32, %c0_i32_0, %c0_i32_1 : i32, i32, i32
  }
  func.func @transform_7(%arg0: i32) -> (i32, i32, i32) {
    %c0_i32 = arith.constant 0 : i32
    %c0_i32_0 = arith.constant 0 : i32
    %c0_i32_1 = arith.constant 0 : i32
    %c0_i32_2 = arith.constant 0 : i32
    return %c0_i32, %c0_i32_0, %c0_i32_1 : i32, i32, i32
  }
  func.func @transform_8(%arg0: i32) -> (i32, i32, i32) {
    %c0_i32 = arith.constant 0 : i32
    %c0_i32_0 = arith.constant 0 : i32
    %c0_i32_1 = arith.constant 0 : i32
    %c0_i32_2 = arith.constant 0 : i32
    return %c0_i32, %c0_i32_0, %c0_i32_1 : i32, i32, i32
  }
  func.func @transform_9(%arg0: i32) -> (i32, i32, i32) {
    %c0_i32 = arith.constant 0 : i32
    %c0_i32_0 = arith.constant 0 : i32
    %c0_i32_1 = arith.constant 0 : i32
    %c0_i32_2 = arith.constant 0 : i32
    return %c0_i32, %c0_i32_0, %c0_i32_1 : i32, i32, i32
  }
  func.func @transform_10(%arg0: i32) -> (i32, i32, i32) {
    %c0_i32 = arith.constant 0 : i32
    %c0_i32_0 = arith.constant 0 : i32
    %c0_i32_1 = arith.constant 0 : i32
    %c0_i32_2 = arith.constant 0 : i32
    return %c0_i32, %c0_i32_0, %c0_i32_1 : i32, i32, i32
  }
  func.func @transform_11(%arg0: i32) -> (i32, i32, i32) {
    %c0_i32 = arith.constant 0 : i32
    %c0_i32_0 = arith.constant 0 : i32
    %c0_i32_1 = arith.constant 0 : i32
    %c0_i32_2 = arith.constant 0 : i32
    return %c0_i32, %c0_i32_0, %c0_i32_1 : i32, i32, i32
  }
  func.func @transform_12(%arg0: i32) -> (i32, i32, i32) {
    %c0_i32 = arith.constant 0 : i32
    %c0_i32_0 = arith.constant 0 : i32
    %c0_i32_1 = arith.constant 0 : i32
    %c0_i32_2 = arith.constant 0 : i32
    return %c0_i32, %c0_i32_0, %c0_i32_1 : i32, i32, i32
  }
  func.func @transform_13(%arg0: i32) -> (i32, i32, i32) {
    %c0_i32 = arith.constant 0 : i32
    %c0_i32_0 = arith.constant 0 : i32
    %c0_i32_1 = arith.constant 0 : i32
    %c0_i32_2 = arith.constant 0 : i32
    return %c0_i32, %c0_i32_0, %c0_i32_1 : i32, i32, i32
  }
  func.func @transform_14(%arg0: i32) -> (i32, i32) {
    %c0_i32 = arith.constant 0 : i32
    %c0_i32_0 = arith.constant 0 : i32
    %c0_i32_1 = arith.constant 0 : i32
    return %c0_i32, %c0_i32_0 : i32, i32
  }
  func.func @transform_15(%arg0: i32) -> (i32, i32) {
    %c0_i32 = arith.constant 0 : i32
    %c0_i32_0 = arith.constant 0 : i32
    %c0_i32_1 = arith.constant 0 : i32
    return %c0_i32, %c0_i32_0 : i32, i32
  }
  func.func @transform_16(%arg0: i32) -> (i32, i32) {
    %c0_i32 = arith.constant 0 : i32
    %c0_i32_0 = arith.constant 0 : i32
    %c0_i32_1 = arith.constant 0 : i32
    return %c0_i32, %c0_i32_0 : i32, i32
  }
  func.func @transform_17(%arg0: i32) -> (i32, i32) {
    %c0_i32 = arith.constant 0 : i32
    %c0_i32_0 = arith.constant 0 : i32
    return %arg0, %c0_i32 : i32, i32
  }
}

</mosaic_0001>

<bundles_post_ra>
// kernel: gpt2_wrapper_forward.1
= control target key start
LH: loop header
LB: loop body
LE: loop exit
PB: predicated region body
PF: predicated region fallthrough
CT: control target
= control target key end

     0   :  { %s3790_s0 = inlined_call_operand.vmem [shape: f32[2,1,8], index: 0, kind: input, shape index: {}]   ;;  %s3791_s1 = inlined_call_operand.vmem [shape: f32[16,32], index: 1, kind: input, shape index: {}]   ;;  %s3792_s2 = inlined_call_operand.vmem [shape: f32[2,32,96], index: 2, kind: input, shape index: {}]   ;;  %s3793_s3 = inlined_call_operand.vmem [shape: f32[2,1,96], index: 3, kind: input, shape index: {}]   ;;  %s3794_s4 = inlined_call_operand.vmem [shape: f32[2,32,32], index: 4, kind: input, shape index: {}]   ;;  %s3795_s5 = inlined_call_operand.vmem [shape: f32[2,1,32], index: 5, kind: input, shape index: {}]   ;;  %s3796_s6 = inlined_call_operand.vmem [shape: f32[2,1,32], index: 6, kind: input, shape index: {}]   ;;  %s3797_s7 = inlined_call_operand.vmem [shape: f32[2,1,32], index: 7, kind: input, shape index: {}]   ;;  %s3798_s8 = inlined_call_operand.vmem [shape: f32[2,1,32], index: 8, kind: input, shape index: {}]   ;;  %s3799_s9 = inlined_call_operand.vmem [shape: f32[2,1,32], index: 9, kind: input, shape index: {}]   ;;  %s3800_s10 = inlined_call_operand.vmem [shape: f32[2,32,128], index: 10, kind: input, shape index: {}]   ;;  %s3801_s11 = inlined_call_operand.vmem [shape: f32[2,1,128], index: 11, kind: input, shape index: {}]   ;;  %s3802_s12 = inlined_call_operand.vmem [shape: f32[2,128,32], index: 12, kind: input, shape index: {}]   ;;  %s3803_s13 = inlined_call_operand.vmem [shape: f32[2,1,32], index: 13, kind: input, shape index: {}]   ;;  %s3804_s14 = inlined_call_operand.vmem [shape: f32[1,32], index: 14, kind: input, shape index: {}]   ;;  %s3805_s15 = inlined_call_operand.vmem [shape: f32[1,32], index: 15, kind: input, shape index: {}]   ;;  %s3806_s16 = inlined_call_operand.vmem [shape: f32[128,32], index: 16, kind: input, shape index: {}]   ;;  %s3807_s17 = inlined_call_operand.hbm [shape: f32[16,128], index: 17, kind: output, shape index: {}]  }
   0x1   :  { %3828 = sst [smem:[#allocation10_spill]] %s3790_s0 }
   0x2   :  { %3829 = sst [smem:[#allocation11_spill]] %s3791_s1 }
   0x3   :  { %22 = vsyncpa [#allocation3], 0 }
   0x4   :  { %24 = vsyncpa [#allocation3 + $0x1], 0  ;;  %s3044_s24 = smov 0   ;;  %s3046_s25 = smov 0  }
   0x5   :  { %s3048_s26 = smov 0   ;;  %s3050_s27 = smov 0  }
   0x6 LB: > { %3830 = sst [smem:[#allocation5_spill]] %s2927_s24  ;;  %s3065_s28 = sadd.s32 4294967295, %s2939_s27   ;;  %s2939_s27 = sphi %s3050_s27, %s3861_s27   ;;  %s2935_s26 = sphi %s3048_s26, %s3863_s26   ;;  %s2931_s25 = sphi %s3046_s25, %s3865_s25   ;;  %s2927_s24 = sphi %s3044_s24, %s3864_s24  }
   0x7   : > { %3831 = sst [smem:[#allocation6_spill]] %s2935_s26  ;;  %s2326_s29 = sadd.s32 4294967294, %s2939_s27  }
   0x8   : > { %s3069_s0 = sadd.s32 1, %s2939_s27   ;;  %s404_s30 = sadd.s32 1, %s2935_s26 }
   0x9   : > { %3832 = sst [smem:[#allocation7_spill]] %s3069_s0  ;;  %s401_s18 = ssub.s32 %s2939_s27, %s3069_s0 }
   0xa   : > { %p414_p0 = scmp.ne.s32.totalorder %s2935_s26, %s2931_s25  ;;  %p402_p1 = scmp.eq.s32.totalorder %s401_s18, 0 }
   0xb   : > { %p415_p2 = scmp.eq.s32.totalorder %s3065_s28, 1  ;;  %p420_p3 = scmp.ne.s32.totalorder %s2931_s25, %s2927_s24 }
   0xc   : > { %p421_p4 = scmp.eq.s32.totalorder %s2326_s29, 1  ;;  %p2329_p7 = scmp.ge.s32.totalorder %s2939_s27, 1 }
   0xd   : > { %s3080_s19 = scalar_select %p402_p1, %s2935_s26, %s404_s30  }
   0xe   : > { %p3082_p5 = por %p415_p2, %p414_p0  ;;  %p3086_p6 = por %p421_p4, %p420_p3 }
   0xf   : > { %3833 = sst [smem:[#allocation8_spill]] %s3080_s19  ;;  %p497_p8 = scmp.lt.s32.totalorder %s2939_s27, 3 }
  0x10   : > { %s3835_s20 = scalar_select %p3086_p6, 1, 0 }
  0x11   : > { %p498_p9 = pnand %p2329_p7, %p497_p8 }
  0x12   : > { %3836 = sst [smem:[#allocation9_spill]] %s3835_s20  ;;  %p551_p10 = scmp.lt.s32.totalorder (!%p498_p9), %s3065_s28, 1 }
  0x13   : > { %501 = sbr.rel (%p498_p9) target bundleno = 5592 (0x15d8), region = 88  ;;  %s3837_s30 = sld [smem:[#allocation11_spill]] (!%p498_p9) }
  0x14   : > { %s3819_s19 = smov (!%p498_p9), 120   ;;  %s3817_s23 = smov (!%p498_p9), 96  }
  0x15   : > { %s3838_s26 = sld [smem:[#allocation10_spill]] (!%p498_p9)  ;;  %s3839_s0 = smov (!%p498_p9), 112  }
  0x16   : > { %s3823_s29 = smov (!%p498_p9), 24  }
  0x18   : > { %s3094_s21 = scalar_select %p551_p10, %s3065_s28, 1  ;;  %vm641_vm0 = vcmask 261120   ;;  %v673_v7 = vld [vmem:[%s3792_s2 + $0x18] sm:$0xff]  ;;  %v2941_v8 = vmov 0.0   ;;  %v672_v9 = vld [vmem:[%s3792_s2 + $0x10] sm:$0xff]  ;;  %vm2942_vm1 = vmmov 0   ;;  %v561_v29 = vlaneseq }
  0x19   : > { %2554 = vmatprep.subr.mxu0 %v2941_v8  ;;  %2562 = vmatprep.mubr.msk.f32.mxu0 %vm2942_vm1, %v2941_v8  ;;  %v671_v10 = vld [vmem:[%s3792_s2 + $0x8] sm:$0xff]  ;;  %v670_v11 = vld [vmem:[%s3792_s2] sm:$0xff]  ;;  %vm574_vm2 = vcmask 64512   ;;  %v2947_v30 = vmov 0   ;;  %vm576_vm3 = vcmask 130048   ;;  %vm578_vm4 = vcmask 195584  }
  0x1a   : > { %s2331_s22 = sshll.u32 %s3094_s21, 3  ;;  %2555 = vmatpush3.msra.mxu0 %v673_v7  ;;  %2604 = vmatprep.subr.mxu1 %v2941_v8  ;;  %v2336_v16 = vld [vmem:[%s3796_s6] ss:$0 sm:$0xff]  ;;  %v562_v31 = vshrl.u32 %v561_v29, 7  ;;  %v583_v35 = vand.u32 127, %v561_v29  ;;  %v2951_v52 = vmov 1  }
  0x1b   : > { %s557_s18 = scalar_lea.vmem %s3837_s30, %s2331_s22  ;;  %2556 = vmatprep.subr.mxu0 %v2941_v8  ;;  %2612 = vmatprep.mubr.msk.f32.mxu1 %vm2942_vm1, %v2941_v8  ;;  %v2337_v18 = vld [vmem:[%s3797_s7] ss:$0 sm:$0xff]  ;;  %s3811_s22 = smov 112   ;;  %v593_v53 = vsel %vm574_vm2, 0, %v2951_v52 }
  0x1c   : > { %v3100_v0 = vld [vmem:[%s557_s18] sm:$0xff]  ;;  %2557 = vmatpush3.msra.mxu0 %v672_v9  ;;  %s3809_s18 = smov 104   ;;  %2832 = vset.pattern.permute.xlu0 %v2947_v30  ;;  %v563_v33 = vsub.s32 0, %v562_v31  ;;  %v594_v57 = vsel %vm576_vm3, %v593_v53, 2 }
  0x1d   : > { %v642_v1 = vsel %vm641_vm0, %v3100_v0, 0.0  ;;  %2558 = vmatprep.subr.mxu0 %v2941_v8  ;;  %v2338_v21 = vld [vmem:[%s3793_s3] ss:$0 sm:$0xff]  ;;  %v595_v59 = vsel %vm578_vm4, %v594_v57, 3  ;;  %v1052_v57 = vld [vmem:[%s3794_s4 + $0x10] sm:$0xff] }
  0x1e   : > { %643 = vadd.xlane.f32.xlu0 %v642_v1  ;;  %2559 = vmatpush3.msra.mxu0 %v671_v10  ;;  %v611_v62 = vrot.slane %v595_v59, %v563_v33  ;;  %v1050_v59 = vld [vmem:[%s3794_s4] sm:$0xff] }
  0x1f   : > { %2560 = vmatprep.subr.mxu0 %v2941_v8 }
  0x20   : > { %2561 = vmatpush3.msra.mxu0 %v670_v11  ;;  %vm2333_vm7 = vcmp.eq.s32.totalorder %v611_v62, 1  ;;  %vm2332_vm8 = vcmp.eq.s32.totalorder %v611_v62, 0  ;;  %vm2335_vm12 = vcmp.eq.s32.totalorder %v611_v62, 3  ;;  %vm2334_vm15 = vcmp.eq.s32.totalorder %v611_v62, 2 }
  0xa7   : > { %v644_v2 = vpop.xlane.xlu0 %643 }
  0xa8   : > { %v646_v3 = vmul.f32 0.03125, %v644_v2 }
  0xaa   : > { %v647_v4 = vsub.f32 %v3100_v0, %v646_v3 }
  0xac   : > { %v648_v5 = vmul.f32 %v647_v4, %v647_v4 }
  0xae   : > { %v649_v6 = vsel %vm641_vm0, %v648_v5, 0.0 }
  0xaf   : > { %650 = vadd.xlane.f32.xlu0 %v649_v6 }
 0x138   : > { %v651_v12 = vpop.xlane.xlu0 %650 }
 0x139   : > { %v652_v13 = vmul.f32 0.03125, %v651_v12 }
 0x13b   : > { %v653_v14 = vadd.f32 1e-05, %v652_v13 }
 0x13d   : > { %2833 = vrsqrt.f32 %v653_v14 }
 0x14a   : > { %v2834_v15 = vpop.eup %2833 }
 0x14b   : > { %v655_v17 = vmul.f32 %v2834_v15, %v647_v4 }
 0x14d   : > { %v662_v19 = vmul.f32 %v2336_v16, %v655_v17 }
 0x14f   : > { %v669_v20 = vadd.f32 %v2337_v18, %v662_v19 }
 0x151   : > { %2563 = vmatmul.mubr.msk.f32.vlgmr.msra.gmra.mxu0 %vm641_vm0, %v669_v20 }
 0x211   : > { %v750_v22 = vpop.f32.mrf.mxu0 }
 0x212   : > { %v3137_v23 = vadd.f32 %v2338_v21, %v750_v22 }
 0x213   : > { %v2564_v24 = vpop.f32.mrf.mxu0 }
 0x214   : > { %763 = vrot.lane.b32.xlu0 %v3137_v23, %s3819_s19  ;;  %767 = vrot.lane.b32.xlu1 %v3137_v23, %s3809_s18  ;;  %v754_v25 = vmul.f32 0.35355338, %v3137_v23 }
 0x216   : > { %2573 = vmatprep.mubr.msk.f32.mxu0 %vm574_vm2, %v754_v25 }
 0x218   : > { %765 = vrot.lane.b32.xlu1 %v3137_v23, %s3811_s22  ;;  %760 = vrot.lane.b32.xlu0 %v754_v25, %s3809_s18  ;;  %s553_s18 = scalar_lea.vmem %s3838_s26, %s3094_s21  ;;  %s3821_s22 = smov 16  }
 0x219   : > { %v559_v32 = vld [vmem:[%s553_s18] sm:$0x1]  ;;  %s3825_s21 = smov 8   ;;  %s3815_s18 = smov 64  }
 0x21a   : > { %v564_v34 = vrot.slane %v559_v32, %v563_v33 }
 0x21c   : > { %568 = vrot.lane.b32.xlu0 %v564_v34, %s3821_s22 }
 0x220   : > { %617 = vperm.xlu0 %2832, %v562_v31  }
 0x224   : > { %588 = vrot.lane.b32.xlu0 %v583_v35, %s3823_s29 }
 0x286   : > { %v3148_v26 = vpop.permute.xlu1 %767  ;;  %v3156_v28 = vpop.permute.xlu0 %763 }
 0x287   : > { %775 = vrot.lane.b32.xlu1 %v3148_v26, %s3817_s23 }
 0x28a   : > { %v3152_v27 = vpop.permute.xlu1 %765  ;;  %v761_v42 = vpop.permute.xlu0 %760 }
 0x28b   : > { %773 = vrot.lane.b32.xlu1 %v3152_v27, %s3817_s23 }
 0x28e   : > { %v569_v45 = vpop.permute.xlu0 %568 }
 0x28f   : > { %771 = vrot.lane.b32.xlu1 %v3156_v28, %s3817_s23 }
 0x293   : > { %769 = vrot.lane.b32.xlu1 %v3137_v23, %s3817_s23  ;;  %s3852_s23 = smov 24  }
 0x297   : > { %756 = vrot.lane.b32.xlu1 %v754_v25, %s3819_s19  ;;  %s3853_s19 = smov 16  }
 0x29b   : > { %758 = vrot.lane.b32.xlu1 %v754_v25, %s3839_s0  ;;  %v618_v48 = vpop.permute.xlu0 %617 }
 0x29f   : > { %565 = vrot.lane.b32.xlu1 %v564_v34, %s3825_s21  ;;  %v589_v56 = vpop.permute.xlu0 %588 }
 0x2a3   : > { %584 = vrot.lane.b32.xlu1 %v583_v35, %s3825_s21 }
 0x2a7   : > { %571 = vrot.lane.b32.xlu1 %v564_v34, %s3823_s29  ;;  %s3855_s29 = smov 120  }
 0x2ab   : > { %586 = vrot.lane.b32.xlu1 %v583_v35, %s3821_s22  ;;  %s3854_s22 = smov 104  }
 0x2f9   : > { %v776_v36 = vpop.permute.xlu1 %775 }
 0x2fa   : > { %2565 = vmatprep.subr.msk.mxu0 %vm574_vm2, %v776_v36 }
 0x2fb   : > { %2566 = vmatpush3.xpose.msk.msra.mxu0 %vm574_vm2, %v776_v36 }
 0x2fd   : > { %v774_v37 = vpop.permute.xlu1 %773 }
 0x2fe   : > { %2567 = vmatprep.subr.msk.mxu0 %vm574_vm2, %v774_v37 }
 0x2ff   : > { %2568 = vmatpush3.xpose.msk.msra.mxu0 %vm574_vm2, %v774_v37 }
 0x301   : > { %v772_v38 = vpop.permute.xlu1 %771 }
 0x302   : > { %2569 = vmatprep.subr.msk.mxu0 %vm574_vm2, %v772_v38 }
 0x303   : > { %2570 = vmatpush3.xpose.msk.msra.mxu0 %vm574_vm2, %v772_v38 }
 0x305   : > { %v770_v39 = vpop.permute.xlu1 %769 }
 0x306   : > { %2571 = vmatprep.subr.msk.mxu0 %vm574_vm2, %v770_v39 }
 0x307   : > { %2572 = vmatpush3.xpose.msk.msra.mxu0 %vm574_vm2, %v770_v39 }
 0x309   : > { %v757_v40 = vpop.permute.xlu1 %756 }
 0x30a   : > { %2574 = vmatmul.mubr.msk.f32.vlgmr.msra.gmra.mxu0 %vm574_vm2, %v757_v40 }
 0x30d   : > { %v759_v41 = vpop.permute.xlu1 %758 }
 0x30e   : > { %2576 = vmatprep.mubr.msk.f32.mxu0 %vm574_vm2, %v759_v41 }
 0x30f   : > { %2577 = vmatmul.mubr.msk.f32.gmra.mxu0 %vm574_vm2, %v761_v42 }
 0x311   : > { %v566_v43 = vpop.permute.xlu1 %565 }
 0x312   : > { %v575_v47 = vsel %vm574_vm2, %v559_v32, %v566_v43 }
 0x313   : > { %v577_v50 = vsel %vm576_vm3, %v575_v47, %v569_v45 }
 0x315   : > { %v585_v44 = vpop.permute.xlu1 %584 }
 0x316   : > { %v590_v49 = vsel %vm574_vm2, %v583_v35, %v585_v44 }
 0x319   : > { %v572_v46 = vpop.permute.xlu1 %571 }
 0x31a   : > { %v579_v54 = vsel %vm578_vm4, %v577_v50, %v572_v46 }
 0x31b   : > { %vm628_vm5 = vcmp.gt.f32.partialorder %v579_v54, 0.5 }
 0x31c   : > { %v629_v60 = vsel %vm628_vm5, 1, %v2947_v30 }
 0x31d   : > { %v587_v51 = vpop.permute.xlu1 %586  ;;  %v633_v63 = vrot.slane %v629_v60, %v563_v33 }
 0x31e   : > { %v591_v55 = vsel %vm576_vm3, %v590_v49, %v587_v51 }
 0x31f   : > { %v592_v58 = vsel %vm578_vm4, %v591_v55, %v589_v56  ;;  %vm3198_vm9 = vcmp.eq.s32.totalorder %v633_v63, 1  ;;  %v1053_v56 = vld [vmem:[%s3794_s4 + $0x18] sm:$0xff] }
 0x320   : > { %v622_v61 = vrot.slane %v592_v58, %v563_v33  ;;  %v1051_v58 = vld [vmem:[%s3794_s4 + $0x8] sm:$0xff] }
 0x322   : > { %vm3194_vm6 = vcmp.ge.s32.totalorder %v618_v48, %v622_v61 }
 0x323   : > { %vm3204_vm10 = vmand %vm2333_vm7, %vm3194_vm6 }
 0x324   : > { %vm3210_vm11 = vmand %vm2332_vm8, %vm3194_vm6 }
 0x325   : > { %vm636_vm13 = vmand %vm3204_vm10, %vm3198_vm9 }
 0x326   : > { %vm635_vm14 = vmand %vm3210_vm11, %vm3198_vm9 }
 0x327   : > { %vm3230_vm5 = vmand %vm2335_vm12, %vm3194_vm6 }
 0x328   : > { %vm3242_vm7 = vmand %vm2334_vm15, %vm3194_vm6 }
 0x329   : > { %vm638_vm8 = vmand %vm3230_vm5, %vm3198_vm9 }
 0x32a   : > { %vm637_vm6 = vmand %vm3242_vm7, %vm3198_vm9 }
 0x3ca   : > { %v2575_v5 = vpop.f32.mrf.mxu0 }
 0x3cb   : > { %v879_v6 = vsel %vm636_vm13, %v2575_v5, -1e+09 }
 0x3cc   : > { %v859_v7 = vpop.f32.mrf.mxu0  ;;  %v885_v9 = vsel %vm641_vm0, %v879_v6, -inf }
 0x3cd   : > { %v878_v11 = vsel %vm635_vm14, %v859_v7, -1e+09  ;;  %886 = vmax.xlane.f32.xlu0 %v885_v9 }
 0x3ce   : > { %v882_v12 = vsel %vm641_vm0, %v878_v11, -inf }
 0x3cf   : > { %v2578_v14 = vpop.f32.mrf.mxu0  ;;  %883 = vmax.xlane.f32.xlu1 %v882_v12 }
 0x3d0   : > { %v881_v15 = vsel %vm638_vm8, %v2578_v14, -1e+09  ;;  %v2353_v14 = vld [vmem:[%s3795_s5] ss:$0 sm:$0xff] }
 0x3d1   : > { %v869_v16 = vpop.f32.mrf.mxu0  ;;  %v891_v17 = vsel %vm641_vm0, %v881_v15, -inf }
 0x3d2   : > { %v880_v18 = vsel %vm637_vm6, %v869_v16, -1e+09 }
 0x3d3   : > { %892 = vmax.xlane.f32.xlu1 %v891_v17  ;;  %v888_v19 = vsel %vm641_vm0, %v880_v18, -inf }
 0x3d4   : > { %889 = vmax.xlane.f32.xlu0 %v888_v19 }
 0x3e4   : > { %930 = vrot.lane.b32.xlu1 %v3152_v27, %s3815_s18 }
 0x3ea   : > { %932 = vrot.lane.b32.xlu0 %v3148_v26, %s3815_s18 }
 0x456   : > { %v887_v20 = vpop.xlane.xlu0 %886 }
 0x457   : > { %v895_v21 = vsub.f32 %v879_v6, %v887_v20 }
 0x458   : > { %v884_v22 = vpop.xlane.xlu1 %883 }
 0x459   : > { %v900_v24 = vmul.f32 1.442695, %v895_v21  ;;  %v894_v25 = vsub.f32 %v878_v11, %v884_v22 }
 0x45b   : > { %2835 = vpow2.f32 %v900_v24  ;;  %v898_v29 = vmul.f32 1.442695, %v894_v25  ;;  %v1168_v25 = vld [vmem:[%s3800_s10 + $0x18] sm:$0xff] }
 0x45c   : > { %v893_v30 = vpop.xlane.xlu1 %892  ;;  %2605 = vmatpush3.msra.mxu1 %v1168_v25 }
 0x45d   : > { %2837 = vpow2.f32 %v898_v29  ;;  %v897_v31 = vsub.f32 %v881_v15, %v893_v30  ;;  %v890_v32 = vpop.xlane.xlu0 %889  ;;  %2606 = vmatprep.subr.mxu1 %v2941_v8  ;;  %v1166_v29 = vld [vmem:[%s3800_s10 + $0x8] sm:$0xff]  ;;  %v1165_v30 = vld [vmem:[%s3800_s10] sm:$0xff] }
 0x45e   : > { %v896_v33 = vsub.f32 %v880_v18, %v890_v32 }
 0x45f   : > { %v904_v34 = vmul.f32 1.442695, %v897_v31 }
 0x460   : > { %v902_v35 = vmul.f32 1.442695, %v896_v33  ;;  %v931_v27 = vpop.permute.xlu1 %930 }
 0x461   : > { %2839 = vpow2.f32 %v904_v34  ;;  %v933_v36 = vpop.permute.xlu0 %932 }
 0x462   : > { %2841 = vpow2.f32 %v902_v35  ;;  %2579 = vmatprep.subr.mxu0 %v933_v36  ;;  %v2354_v35 = vld [vmem:[%s3798_s8] ss:$0 sm:$0xff] }
 0x463   : > { %2580 = vmatpush3.msra.mxu0 %v933_v36 }
 0x464   : > { %2581 = vmatprep.subr.mxu0 %v931_v27 }
 0x465   : > { %2582 = vmatpush3.msra.mxu0 %v931_v27  ;;  %v2355_v27 = vld [vmem:[%s3799_s9] ss:$0 sm:$0xff] }
 0x468   : > { %v2836_v26 = vpop.eup %2835 }
 0x469   : > { %v909_v37 = vsel %vm641_vm0, %v2836_v26, 0.0 }
 0x46a   : > { %v2838_v38 = vpop.eup %2837  ;;  %910 = vadd.xlane.f32.xlu1 %v909_v37 }
 0x46b   : > { %v906_v39 = vsel %vm641_vm0, %v2838_v38, 0.0 }
 0x46c   : > { %907 = vadd.xlane.f32.xlu0 %v906_v39  ;;  %v1272_v39 = vld [vmem:[%s3802_s12 + $0x70] sm:$0xff] }
 0x46e   : > { %v2840_v40 = vpop.eup %2839 }
 0x46f   : > { %v2842_v41 = vpop.eup %2841  ;;  %v915_v42 = vsel %vm641_vm0, %v2840_v40, 0.0 }
 0x470   : > { %916 = vadd.xlane.f32.xlu1 %v915_v42  ;;  %v912_v43 = vsel %vm641_vm0, %v2842_v41, 0.0  ;;  %v1269_v42 = vld [vmem:[%s3802_s12 + $0x58] sm:$0xff] }
 0x471   : > { %913 = vadd.xlane.f32.xlu0 %v912_v43  ;;  %v1268_v43 = vld [vmem:[%s3802_s12 + $0x50] sm:$0xff] }
 0x481   : > { %928 = vrot.lane.b32.xlu1 %v3156_v28, %s3815_s18 }
 0x487   : > { %926 = vrot.lane.b32.xlu0 %v3137_v23, %s3815_s18 }
 0x4f3   : > { %v911_v44 = vpop.xlane.xlu1 %910 }
 0x4f4   : > { %2843 = vrcp.f32 %v911_v44  ;;  %v1267_v44 = vld [vmem:[%s3802_s12 + $0x48] sm:$0xff] }
 0x4f5   : > { %v908_v45 = vpop.xlane.xlu0 %907 }
 0x4f6   : > { %2845 = vrcp.f32 %v908_v45  ;;  %v1266_v45 = vld [vmem:[%s3802_s12 + $0x40] sm:$0xff] }
 0x4f9   : > { %v917_v46 = vpop.xlane.xlu1 %916 }
 0x4fa   : > { %2847 = vrcp.f32 %v917_v46  ;;  %v914_v47 = vpop.xlane.xlu0 %913  ;;  %v1265_v46 = vld [vmem:[%s3802_s12 + $0x38] sm:$0xff] }
 0x4fb   : > { %2849 = vrcp.f32 %v914_v47  ;;  %v1264_v47 = vld [vmem:[%s3802_s12 + $0x30] sm:$0xff] }
 0x4fd   : > { %v929_v48 = vpop.permute.xlu1 %928 }
 0x4fe   : > { %v927_v49 = vpop.permute.xlu0 %926  ;;  %2583 = vmatprep.subr.mxu0 %v929_v48 }
 0x4ff   : > { %2584 = vmatpush3.msra.mxu0 %v929_v48  ;;  %v1263_v48 = vld [vmem:[%s3802_s12 + $0x28] sm:$0xff] }
 0x500   : > { %2585 = vmatprep.subr.mxu0 %v927_v49 }
 0x501   : > { %2586 = vmatpush3.msra.mxu0 %v927_v49  ;;  %v2844_v50 = vpop.eup %2843  ;;  %v1262_v49 = vld [vmem:[%s3802_s12 + $0x20] sm:$0xff] }
 0x502   : > { %2593 = vmatprep.subr.mxu0 %v2941_v8  ;;  %v923_v23 = vmul.f32 %v2844_v50, %v2836_v26  ;;  %v1261_v50 = vld [vmem:[%s3802_s12 + $0x18] sm:$0xff] }
 0x503   : > { %v2846_v28 = vpop.eup %2845 }
 0x504   : > { %v922_v51 = vmul.f32 %v2846_v28, %v2838_v38  ;;  %v1273_v38 = vld [vmem:[%s3802_s12 + $0x78] sm:$0xff]  ;;  %v1260_v28 = vld [vmem:[%s3802_s12 + $0x10] sm:$0xff] }
 0x506   : > { %2587 = vmatprep.mubr.msk.f32.mxu0 %vm641_vm0, %v922_v51  ;;  %v1259_v51 = vld [vmem:[%s3802_s12 + $0x8] sm:$0xff] }
 0x507   : > { %v2848_v52 = vpop.eup %2847  ;;  %2588 = vmatmul.mubr.msk.f32.vlgmr.msra.gmra.mxu0 %vm641_vm0, %v923_v23  ;;  %v1258_v23 = vld [vmem:[%s3802_s12] sm:$0xff] }
 0x508   : > { %v2850_v53 = vpop.eup %2849  ;;  %v925_v55 = vmul.f32 %v2848_v52, %v2840_v40  ;;  %2594 = vmatpush3.msra.mxu0 %v1053_v56  ;;  %v1271_v40 = vld [vmem:[%s3802_s12 + $0x68] sm:$0xff]  ;;  %v2356_v52 = vld [vmem:[%s3801_s11] ss:$0 sm:$0xff] }
 0x509   : > { %v924_v54 = vmul.f32 %v2850_v53, %v2842_v41  ;;  %2595 = vmatprep.subr.mxu0 %v2941_v8  ;;  %v1270_v41 = vld [vmem:[%s3802_s12 + $0x60] sm:$0xff] }
 0x50a   : > { %2596 = vmatpush3.msra.mxu0 %v1052_v57 }
 0x50b   : > { %2590 = vmatprep.mubr.msk.f32.mxu0 %vm641_vm0, %v924_v54  ;;  %2597 = vmatprep.subr.mxu0 %v2941_v8 }
 0x50c   : > { %2591 = vmatmul.mubr.msk.f32.gmra.mxu0 %vm641_vm0, %v925_v55 }
 0x50d   : > { %2601 = vmatprep.mubr.msk.f32.mxu0 %vm2942_vm1, %v2941_v8  ;;  %2598 = vmatpush3.msra.mxu0 %v1051_v58 }
 0x50e   : > { %2599 = vmatprep.subr.mxu0 %v2941_v8 }
 0x50f   : > { %2600 = vmatpush3.msra.mxu0 %v1050_v59 }
 0x510   : > { %2615 = vmatprep.subr.mxu0 %v2941_v8 }
 0x5c7   : > { %v2589_v60 = vpop.f32.mrf.mxu0 }
 0x5c8   : > { %1036 = vrot.lane.b32.xlu1 %v2589_v60, %s3825_s21  ;;  %s3856_s21 = smov 96  }
 0x5c9   : > { %v1016_v61 = vpop.f32.mrf.mxu0 }
 0x5cc   : > { %v2592_v62 = vpop.f32.mrf.mxu0 }
 0x5cd   : > { %1044 = vrot.lane.b32.xlu1 %v2592_v62, %s3852_s23 }
 0x5ce   : > { %v1026_v63 = vpop.f32.mrf.mxu0 }
 0x5cf   : > { %1040 = vrot.lane.b32.xlu0 %v1026_v63, %s3853_s19 }
 0x63a   : > { %v1037_v1 = vpop.permute.xlu1 %1036 }
 0x63b   : > { %v1047_v5 = vsel %vm574_vm2, %v1016_v61, %v1037_v1 }
 0x63f   : > { %v1045_v7 = vpop.permute.xlu1 %1044 }
 0x641   : > { %v1041_v6 = vpop.permute.xlu0 %1040 }
 0x642   : > { %v1048_v9 = vsel %vm576_vm3, %v1047_v5, %v1041_v6  ;;  %v2358_v6 = vld [vmem:[%s3803_s13] ss:$0 sm:$0xff] }
 0x643   : > { %v1049_v11 = vsel %vm578_vm4, %v1048_v9, %v1045_v7 }
 0x644   : > { %2602 = vmatmul.mubr.msk.f32.vlgmr.msra.gmra.mxu0 %vm641_vm0, %v1049_v11 }
 0x645   : > { %2647 = vmatprep.mubr.msk.f32.mxu0 %vm2942_vm1, %v2941_v8  ;;  %2616 = vmatpush3.msra.mxu0 %v1273_v38 }
 0x646   : > { %2617 = vmatprep.subr.mxu0 %v2941_v8 }
 0x647   : > { %2618 = vmatpush3.msra.mxu0 %v1272_v39 }
 0x648   : > { %2619 = vmatprep.subr.mxu0 %v2941_v8 }
 0x649   : > { %2620 = vmatpush3.msra.mxu0 %v1271_v40 }
 0x64a   : > { %2621 = vmatprep.subr.mxu0 %v2941_v8 }
 0x64b   : > { %2622 = vmatpush3.msra.mxu0 %v1270_v41 }
 0x64c   : > { %2623 = vmatprep.subr.mxu0 %v2941_v8 }
 0x64d   : > { %2624 = vmatpush3.msra.mxu0 %v1269_v42 }
 0x64e   : > { %2625 = vmatprep.subr.mxu0 %v2941_v8 }
 0x64f   : > { %2626 = vmatpush3.msra.mxu0 %v1268_v43 }
 0x650   : > { %2627 = vmatprep.subr.mxu0 %v2941_v8 }
 0x651   : > { %2628 = vmatpush3.msra.mxu0 %v1267_v44 }
 0x652   : > { %2629 = vmatprep.subr.mxu0 %v2941_v8 }
 0x653   : > { %2630 = vmatpush3.msra.mxu0 %v1266_v45 }
 0x654   : > { %2631 = vmatprep.subr.mxu0 %v2941_v8 }
 0x655   : > { %2632 = vmatpush3.msra.mxu0 %v1265_v46 }
 0x656   : > { %2633 = vmatprep.subr.mxu0 %v2941_v8 }
 0x657   : > { %2634 = vmatpush3.msra.mxu0 %v1264_v47 }
 0x658   : > { %2635 = vmatprep.subr.mxu0 %v2941_v8 }
 0x659   : > { %2636 = vmatpush3.msra.mxu0 %v1263_v48 }
 0x65a   : > { %2637 = vmatprep.subr.mxu0 %v2941_v8 }
 0x65b   : > { %2638 = vmatpush3.msra.mxu0 %v1262_v49 }
 0x65c   : > { %2639 = vmatprep.subr.mxu0 %v2941_v8 }
 0x65d   : > { %2640 = vmatpush3.msra.mxu0 %v1261_v50 }
 0x65e   : > { %2641 = vmatprep.subr.mxu0 %v2941_v8 }
 0x65f   : > { %2642 = vmatpush3.msra.mxu0 %v1260_v28 }
 0x660   : > { %2643 = vmatprep.subr.mxu0 %v2941_v8 }
 0x661   : > { %2644 = vmatpush3.msra.mxu0 %v1259_v51 }
 0x662   : > { %2645 = vmatprep.subr.mxu0 %v2941_v8 }
 0x663   : > { %2646 = vmatpush3.msra.mxu0 %v1258_v23 }
 0x664   : > { %2689 = vmatprep.subr.mxu0 %v2941_v8 }
 0x704   : > { %v1123_v12 = vpop.f32.mrf.mxu0 }
 0x705   : > { %v1127_v15 = vadd.f32 %v1123_v12, %v3100_v0  ;;  %v1167_v0 = vld [vmem:[%s3800_s10 + $0x10] sm:$0xff] }
 0x706   : > { %v2603_v16 = vpop.f32.mrf.mxu0  ;;  %2607 = vmatpush3.msra.mxu1 %v1167_v0 }
 0x707   : > { %v3314_v17 = vadd.f32 %v2353_v14, %v1127_v15  ;;  %2608 = vmatprep.subr.mxu1 %v2941_v8 }
 0x708   : > { %2609 = vmatpush3.msra.mxu1 %v1166_v29 }
 0x709   : > { %v1138_v18 = vsel %vm641_vm0, %v3314_v17, 0.0  ;;  %2610 = vmatprep.subr.mxu1 %v2941_v8 }
 0x70a   : > { %1139 = vadd.xlane.f32.xlu0 %v1138_v18  ;;  %2611 = vmatpush3.msra.mxu1 %v1165_v30  ;;  %v2361_v30 = vld [vmem:[%s3796_s6 + $0x1] ss:$0 sm:$0xff] }
 0x70b   : > { %2650 = vmatprep.subr.mxu1 %v2941_v8 }
 0x793   : > { %v1140_v19 = vpop.xlane.xlu0 %1139 }
 0x794   : > { %v1141_v20 = vmul.f32 0.03125, %v1140_v19 }
 0x796   : > { %v1142_v21 = vsub.f32 %v3314_v17, %v1141_v20  ;;  %v2366_v20 = vld [vmem:[%s3792_s2 + $0x38] sm:$0xff] }
 0x798   : > { %v1143_v22 = vmul.f32 %v1142_v21, %v1142_v21 }
 0x79a   : > { %v1144_v24 = vsel %vm641_vm0, %v1143_v22, 0.0  ;;  %v2363_v22 = vld [vmem:[%s3792_s2 + $0x20] sm:$0xff] }
 0x79b   : > { %1145 = vadd.xlane.f32.xlu1 %v1144_v24 }
 0x824   : > { %v1146_v31 = vpop.xlane.xlu1 %1145 }
 0x825   : > { %v1147_v32 = vmul.f32 0.03125, %v1146_v31 }
 0x827   : > { %v1148_v33 = vadd.f32 1e-05, %v1147_v32  ;;  %v2362_v32 = vld [vmem:[%s3797_s7 + $0x1] ss:$0 sm:$0xff] }
 0x829   : > { %2851 = vrsqrt.f32 %v1148_v33 }
 0x836   : > { %v2852_v34 = vpop.eup %2851 }
 0x837   : > { %v1150_v36 = vmul.f32 %v2852_v34, %v1142_v21  ;;  %v2364_v21 = vld [vmem:[%s3792_s2 + $0x28] sm:$0xff] }
 0x839   : > { %v1157_v26 = vmul.f32 %v2354_v35, %v1150_v36  ;;  %v2368_v35 = vld [vmem:[%s3793_s3 + $0x1] ss:$0 sm:$0xff] }
 0x83b   : > { %v1164_v37 = vadd.f32 %v2355_v27, %v1157_v26 }
 0x83d   : > { %2613 = vmatmul.mubr.msk.f32.vlgmr.msra.gmra.mxu1 %vm641_vm0, %v1164_v37 }
 0x83e   : > { %2658 = vmatprep.mubr.msk.f32.mxu1 %vm2942_vm1, %v2941_v8  ;;  %2651 = vmatpush3.msra.mxu1 %v2366_v20 }
 0x83f   : > { %2652 = vmatprep.subr.mxu1 %v2941_v8 }
 0x8fd   : > { %v1245_v53 = vpop.f32.mrf.mxu1 }
 0x8fe   : > { %v1246_v54 = vadd.f32 %v2356_v52, %v1245_v53 }
 0x8ff   : > { %v2614_v55 = vpop.f32.mrf.mxu1 }
 0x900   : > { %v1250_v56 = vmul.f32 0.044715, %v1246_v54  ;;  %v1249_v62 = vmul.f32 0.5, %v1246_v54 }
 0x902   : > { %v1251_v57 = vmul.f32 %v1250_v56, %v1246_v54 }
 0x904   : > { %v1252_v58 = vmul.f32 %v1251_v57, %v1246_v54 }
 0x906   : > { %v1253_v59 = vadd.f32 %v1252_v58, %v1246_v54 }
 0x908   : > { %v1254_v60 = vmul.f32 0.7978846, %v1253_v59 }
 0x90a   : > { %2853 = vtanh.f32 %v1254_v60 }
 0x917   : > { %v2854_v61 = vpop.eup %2853 }
 0x918   : > { %v1256_v63 = vadd.f32 1.0, %v2854_v61 }
 0x91a   : > { %v1257_v1 = vmul.f32 %v1256_v63, %v1249_v62 }
 0x91c   : > { %2648 = vmatmul.mubr.f32.vlgmr.msra.gmra.mxu0 %v1257_v1 }
 0x91d   : > { %2697 = vmatprep.mubr.msk.f32.mxu0 %vm2942_vm1, %v2941_v8 }
 0x9dc   : > { %v1340_v5 = vpop.f32.mrf.mxu0 }
 0x9dd   : > { %v1344_v7 = vadd.f32 %v1340_v5, %v3314_v17  ;;  %v2365_v17 = vld [vmem:[%s3792_s2 + $0x30] sm:$0xff] }
 0x9de   : > { %v2649_v9 = vpop.f32.mrf.mxu0  ;;  %2653 = vmatpush3.msra.mxu1 %v2365_v17 }
 0x9df   : > { %v3418_v11 = vadd.f32 %v2358_v6, %v1344_v7  ;;  %2654 = vmatprep.subr.mxu1 %v2941_v8 }
 0x9e0   : > { %2655 = vmatpush3.msra.mxu1 %v2364_v21 }
 0x9e1   : > { %v1357_v12 = vsel %vm641_vm0, %v3418_v11, 0.0  ;;  %2656 = vmatprep.subr.mxu1 %v2941_v8 }
 0x9e2   : > { %1358 = vadd.xlane.f32.xlu0 %v1357_v12  ;;  %2657 = vmatpush3.msra.mxu1 %v2363_v22 }
 0xa6b   : > { %v1359_v14 = vpop.xlane.xlu0 %1358 }
 0xa6c   : > { %v1360_v15 = vmul.f32 0.03125, %v1359_v14 }
 0xa6e   : > { %v1361_v16 = vsub.f32 %v3418_v11, %v1360_v15 }
 0xa70   : > { %v1362_v18 = vmul.f32 %v1361_v16, %v1361_v16 }
 0xa72   : > { %v1363_v19 = vsel %vm641_vm0, %v1362_v18, 0.0 }
 0xa73   : > { %1364 = vadd.xlane.f32.xlu0 %v1363_v19 }
 0xafc   : > { %v1365_v24 = vpop.xlane.xlu0 %1364 }
 0xafd   : > { %v1366_v25 = vmul.f32 0.03125, %v1365_v24 }
 0xaff   : > { %v1367_v0 = vadd.f32 1e-05, %v1366_v25 }
 0xb01   : > { %2855 = vrsqrt.f32 %v1367_v0 }
 0xb0e   : > { %v2856_v29 = vpop.eup %2855 }
 0xb0f   : > { %v1369_v31 = vmul.f32 %v2856_v29, %v1361_v16 }
 0xb11   : > { %v1376_v33 = vmul.f32 %v2361_v30, %v1369_v31 }
 0xb13   : > { %v1383_v34 = vadd.f32 %v2362_v32, %v1376_v33 }
 0xb15   : > { %2659 = vmatmul.mubr.msk.f32.vlgmr.msra.gmra.mxu1 %vm641_vm0, %v1383_v34 }
 0xbd5   : > { %v1466_v36 = vpop.f32.mrf.mxu1 }
 0xbd6   : > { %v3449_v27 = vadd.f32 %v2368_v35, %v1466_v36  ;;  %v2385_v36 = vld [vmem:[%s3794_s4 + $0x38] sm:$0xff] }
 0xbd7   : > { %v2660_v26 = vpop.f32.mrf.mxu1  ;;  %2690 = vmatpush3.msra.mxu0 %v2385_v36 }
 0xbd8   : > { %1481 = vrot.lane.b32.xlu0 %v3449_v27, %s3839_s0  ;;  %1483 = vrot.lane.b32.xlu1 %v3449_v27, %s3854_s22  ;;  %v1470_v37 = vmul.f32 0.35355338, %v3449_v27  ;;  %v2383_v26 = vld [vmem:[%s3794_s4 + $0x28] sm:$0xff] }
 0xbd9   : > { %2691 = vmatprep.subr.mxu0 %v2941_v8 }
 0xbda   : > { %2669 = vmatprep.mubr.msk.f32.mxu1 %vm574_vm2, %v1470_v37 }
 0xbdc   : > { %1479 = vrot.lane.b32.xlu1 %v3449_v27, %s3855_s29 }
 0xc4a   : > { %v3459_v38 = vpop.permute.xlu0 %1481  ;;  %v1484_v39 = vpop.permute.xlu1 %1483 }
 0xc4b   : > { %1489 = vrot.lane.b32.xlu0 %v3459_v38, %s3856_s21  ;;  %1491 = vrot.lane.b32.xlu1 %v1484_v39, %s3856_s21 }
 0xc4e   : > { %v3464_v40 = vpop.permute.xlu1 %1479 }
 0xc4f   : > { %1485 = vrot.lane.b32.xlu0 %v3449_v27, %s3856_s21  ;;  %1487 = vrot.lane.b32.xlu1 %v3464_v40, %s3856_s21  ;;  %s548_s21 = sand.u32 1, %s2931_s25  }
 0xc50   : > { %s2245_s20 = scalar_lea.sflag [#allocation3], %s548_s21 }
 0xc53   : > { %1474 = vrot.lane.b32.xlu0 %v1470_v37, %s3839_s0  ;;  %1472 = vrot.lane.b32.xlu1 %v1470_v37, %s3855_s29  ;;  %s3857_s0 = smov 64   ;;  %s3858_s29 = smov 8  }
 0xc57   : > { %1476 = vrot.lane.b32.xlu1 %v1470_v37, %s3854_s22 }
 0xcbd   : > { %v1492_v41 = vpop.permute.xlu1 %1491  ;;  %v1490_v42 = vpop.permute.xlu0 %1489 }
 0xcbe   : > { %2661 = vmatprep.subr.msk.mxu1 %vm574_vm2, %v1492_v41 }
 0xcbf   : > { %2662 = vmatpush3.xpose.msk.msra.mxu1 %vm574_vm2, %v1492_v41 }
 0xcc0   : > { %2663 = vmatprep.subr.msk.mxu1 %vm574_vm2, %v1490_v42 }
 0xcc1   : > { %v1488_v43 = vpop.permute.xlu1 %1487  ;;  %v1486_v44 = vpop.permute.xlu0 %1485 }
 0xcc3   : > { %2664 = vmatpush3.xpose.msk.msra.mxu1 %vm574_vm2, %v1490_v42 }
 0xcc4   : > { %2665 = vmatprep.subr.msk.mxu1 %vm574_vm2, %v1488_v43 }
 0xcc5   : > { %v1473_v45 = vpop.permute.xlu1 %1472  ;;  %v1475_v46 = vpop.permute.xlu0 %1474 }
 0xcc7   : > { %2666 = vmatpush3.xpose.msk.msra.mxu1 %vm574_vm2, %v1488_v43 }
 0xcc8   : > { %2667 = vmatprep.subr.msk.mxu1 %vm574_vm2, %v1486_v44 }
 0xcc9   : > { %v1477_v47 = vpop.permute.xlu1 %1476 }
 0xccb   : > { %2668 = vmatpush3.xpose.msk.msra.mxu1 %vm574_vm2, %v1486_v44 }
 0xcce   : > { %2670 = vmatmul.mubr.msk.f32.vlgmr.msra.gmra.mxu1 %vm574_vm2, %v1473_v45 }
 0xccf   : > { %2672 = vmatprep.mubr.msk.f32.mxu1 %vm574_vm2, %v1475_v46 }
 0xcd2   : > { %2673 = vmatmul.mubr.msk.f32.gmra.mxu1 %vm574_vm2, %v1477_v47 }
 0xd8e   : > { %v2671_v48 = vpop.f32.mrf.mxu1 }
 0xd8f   : > { %v1595_v49 = vsel %vm636_vm13, %v2671_v48, -1e+09 }
 0xd90   : > { %v1575_v50 = vpop.f32.mrf.mxu1  ;;  %v1601_v28 = vsel %vm641_vm0, %v1595_v49, -inf }
 0xd91   : > { %v1594_v51 = vsel %vm635_vm14, %v1575_v50, -1e+09  ;;  %1602 = vmax.xlane.f32.xlu1 %v1601_v28 }
 0xd92   : > { %v2674_v23 = vpop.f32.mrf.mxu1  ;;  %v1598_v52 = vsel %vm641_vm0, %v1594_v51, -inf }
 0xd93   : > { %1599 = vmax.xlane.f32.xlu0 %v1598_v52  ;;  %v1597_v4 = vsel %vm638_vm8, %v2674_v23, -1e+09 }
 0xd94   : > { %v1585_v53 = vpop.f32.mrf.mxu1  ;;  %v1607_v55 = vsel %vm641_vm0, %v1597_v4, -inf }
 0xd95   : > { %v1596_v3 = vsel %vm637_vm6, %v1585_v53, -1e+09 }
 0xd96   : > { %v1604_v54 = vsel %vm641_vm0, %v1596_v3, -inf }
 0xd97   : > { %1605 = vmax.xlane.f32.xlu0 %v1604_v54 }
 0xd9b   : > { %1608 = vmax.xlane.f32.xlu0 %v1607_v55  ;;  %v2396_v55 = vld [vmem:[%s3800_s10 + $0x38] sm:$0xff] }
 0xda2   : > { %1648 = vrot.lane.b32.xlu1 %v1484_v39, %s3857_s0 }
 0xe1a   : > { %v1603_v56 = vpop.xlane.xlu1 %1602 }
 0xe1b   : > { %v1611_v13 = vsub.f32 %v1595_v49, %v1603_v56  ;;  %v2388_v49 = vld [vmem:[%s3795_s5 + $0x1] ss:$0 sm:$0xff]  ;;  %v2394_v56 = vld [vmem:[%s3800_s10 + $0x28] sm:$0xff] }
 0xe1c   : > { %v1600_v57 = vpop.xlane.xlu0 %1599 }
 0xe1d   : > { %v1616_v58 = vmul.f32 1.442695, %v1611_v13  ;;  %v1610_v59 = vsub.f32 %v1594_v51, %v1600_v57  ;;  %v2393_v13 = vld [vmem:[%s3800_s10 + $0x20] sm:$0xff] }
 0xe1e   : > { %v1649_v60 = vpop.permute.xlu1 %1648 }
 0xe1f   : > { %2857 = vpow2.f32 %v1616_v58  ;;  %v1614_v61 = vmul.f32 1.442695, %v1610_v59  ;;  %2675 = vmatprep.subr.mxu1 %v1649_v60 }
 0xe20   : > { %2676 = vmatpush3.msra.mxu1 %v1649_v60  ;;  %v1606_v10 = vpop.xlane.xlu0 %1605 }
 0xe21   : > { %2859 = vpow2.f32 %v1614_v61  ;;  %v1612_v14 = vsub.f32 %v1596_v3, %v1606_v10  ;;  %v2391_v61 = vld [vmem:[%s3798_s8 + $0x1] ss:$0 sm:$0xff] }
 0xe23   : > { %v1618_v15 = vmul.f32 1.442695, %v1612_v14  ;;  %v2409_v14 = vld [vmem:[%s3802_s12 + $0xc8] sm:$0xff] }
 0xe24   : > { %v1609_v2 = vpop.xlane.xlu0 %1608 }
 0xe25   : > { %v1613_v62 = vsub.f32 %v1597_v4, %v1609_v2  ;;  %v2392_v2 = vld [vmem:[%s3799_s9 + $0x1] ss:$0 sm:$0xff] }
 0xe27   : > { %v1620_v63 = vmul.f32 1.442695, %v1613_v62 }
 0xe29   : > { %2861 = vpow2.f32 %v1620_v63 }
 0xe2a   : > { %2863 = vpow2.f32 %v1618_v15  ;;  %v2408_v15 = vld [vmem:[%s3802_s12 + $0xc0] sm:$0xff] }
 0xe2c   : > { %v2858_v1 = vpop.eup %2857 }
 0xe2d   : > { %v1625_v5 = vsel %vm641_vm0, %v2858_v1, 0.0 }
 0xe2e   : > { %v2860_v6 = vpop.eup %2859  ;;  %1626 = vadd.xlane.f32.xlu0 %v1625_v5  ;;  %v2414_v5 = vld [vmem:[%s3802_s12 + $0xf0] sm:$0xff] }
 0xe2f   : > { %v1622_v7 = vsel %vm641_vm0, %v2860_v6, 0.0 }
 0xe30   : > { %1623 = vadd.xlane.f32.xlu1 %v1622_v7  ;;  %v2412_v7 = vld [vmem:[%s3802_s12 + $0xe0] sm:$0xff] }
 0xe36   : > { %v2862_v9 = vpop.eup %2861 }
 0xe37   : > { %v1631_v12 = vsel %vm641_vm0, %v2862_v9, 0.0  ;;  %v2864_v16 = vpop.eup %2863 }
 0xe38   : > { %1632 = vadd.xlane.f32.xlu0 %v1631_v12  ;;  %v1628_v18 = vsel %vm641_vm0, %v2864_v16, 0.0  ;;  %v2410_v12 = vld [vmem:[%s3802_s12 + $0xd0] sm:$0xff] }
 0xe41   : > { %1644 = vrot.lane.b32.xlu1 %v3464_v40, %s3857_s0 }
 0xe4e   : > { %1646 = vrot.lane.b32.xlu0 %v3459_v38, %s3857_s0  ;;  %v2382_v38 = vld [vmem:[%s3794_s4 + $0x20] sm:$0xff] }
 0xe65   : > { %1629 = vadd.xlane.f32.xlu1 %v1628_v18  ;;  %v2406_v18 = vld [vmem:[%s3802_s12 + $0xb0] sm:$0xff] }
 0xe76   : > { %1642 = vrot.lane.b32.xlu1 %v3449_v27, %s3857_s0  ;;  %v2384_v27 = vld [vmem:[%s3794_s4 + $0x30] sm:$0xff]  ;;  %s2330_s0 = sshll.u32 %s548_s21, 3 }
 0xe77   : > { %2692 = vmatpush3.msra.mxu0 %v2384_v27  ;;  %s550_s18 = scalar_lea.vmem [#allocation2], %s2330_s0 }
 0xe78   : > { %2693 = vmatprep.subr.mxu0 %v2941_v8 }
 0xe79   : > { %2694 = vmatpush3.msra.mxu0 %v2383_v26 }
 0xe7a   : > { %2695 = vmatprep.subr.mxu0 %v2941_v8 }
 0xe7b   : > { %2696 = vmatpush3.msra.mxu0 %v2382_v38 }
 0xe7c   : > { %2711 = vmatprep.subr.mxu0 %v2941_v8 }
 0xeb7   : > { %v1627_v20 = vpop.xlane.xlu0 %1626 }
 0xeb9   : > { %v1624_v19 = vpop.xlane.xlu1 %1623 }
 0xeba   : > { %2865 = vrcp.f32 %v1624_v19  ;;  %v2405_v19 = vld [vmem:[%s3802_s12 + $0xa8] sm:$0xff] }
 0xebb   : > { %2867 = vrcp.f32 %v1627_v20  ;;  %v2404_v20 = vld [vmem:[%s3802_s12 + $0xa0] sm:$0xff] }
 0xebd   : > { %v1645_v24 = vpop.permute.xlu1 %1644 }
 0xec1   : > { %v1633_v17 = vpop.xlane.xlu0 %1632 }
 0xec2   : > { %2869 = vrcp.f32 %v1633_v17  ;;  %v2403_v17 = vld [vmem:[%s3802_s12 + $0x98] sm:$0xff] }
 0xec5   : > { %v1647_v21 = vpop.permute.xlu0 %1646 }
 0xec6   : > { %2677 = vmatprep.subr.mxu1 %v1647_v21 }
 0xec7   : > { %v2866_v22 = vpop.eup %2865  ;;  %2678 = vmatpush3.msra.mxu1 %v1647_v21  ;;  %v2402_v21 = vld [vmem:[%s3802_s12 + $0x90] sm:$0xff] }
 0xec8   : > { %2679 = vmatprep.subr.mxu1 %v1645_v24  ;;  %v1638_v25 = vmul.f32 %v2866_v22, %v2860_v6  ;;  %v2868_v29 = vpop.eup %2867  ;;  %v2413_v6 = vld [vmem:[%s3802_s12 + $0xe8] sm:$0xff] }
 0xec9   : > { %2680 = vmatpush3.msra.mxu1 %v1645_v24  ;;  %v1639_v31 = vmul.f32 %v2868_v29, %v2858_v1  ;;  %v2415_v1 = vld [vmem:[%s3802_s12 + $0xf8] sm:$0xff]  ;;  %v2401_v22 = vld [vmem:[%s3802_s12 + $0x88] sm:$0xff]  ;;  %v2400_v24 = vld [vmem:[%s3802_s12 + $0x80] sm:$0xff] }
 0xeca   : > { %2683 = vmatprep.mubr.msk.f32.mxu1 %vm641_vm0, %v1638_v25  ;;  %v2398_v25 = vld [vmem:[%s3801_s11 + $0x1] ss:$0 sm:$0xff] }
 0xecf   : > { %v2870_v32 = vpop.eup %2869 }
 0xed0   : > { %v1641_v35 = vmul.f32 %v2870_v32, %v2862_v9  ;;  %v2411_v9 = vld [vmem:[%s3802_s12 + $0xd8] sm:$0xff] }
 0xeee   : > { %v1630_v0 = vpop.xlane.xlu1 %1629 }
 0xeef   : > { %2871 = vrcp.f32 %v1630_v0 }
 0xef2   : > { %v1643_v30 = vpop.permute.xlu1 %1642 }
 0xef3   : > { %2681 = vmatprep.subr.mxu1 %v1643_v30 }
 0xef4   : > { %2682 = vmatpush3.msra.mxu1 %v1643_v30 }
 0xef5   : > { %2684 = vmatmul.mubr.msk.f32.vlgmr.msra.gmra.mxu1 %vm641_vm0, %v1639_v31  ;;  %2700 = vmatprep.subr.mxu1 %v2941_v8 }
 0xef6   : > { %2701 = vmatpush3.msra.mxu1 %v2396_v55  ;;  %v2111_v55 = vld [vmem:[%s3806_s16 + $0x28] sm:$0xff] }
 0xef7   : > { %2702 = vmatprep.subr.mxu1 %v2941_v8 }
 0xefc   : > { %v2872_v33 = vpop.eup %2871 }
 0xefd   : > { %v1640_v34 = vmul.f32 %v2872_v33, %v2864_v16  ;;  %v2407_v16 = vld [vmem:[%s3802_s12 + $0xb8] sm:$0xff] }
 0xeff   : > { %2686 = vmatprep.mubr.msk.f32.mxu1 %vm641_vm0, %v1640_v34 }
 0xf00   : > { %2687 = vmatmul.mubr.msk.f32.gmra.mxu1 %vm641_vm0, %v1641_v35 }
 0xf01   : > { %2708 = vmatprep.mubr.msk.f32.mxu1 %vm2942_vm1, %v2941_v8 }
 0xfb5   : > { %v2685_v37 = vpop.f32.mrf.mxu1 }
 0xfb6   : > { %1752 = vrot.lane.b32.xlu0 %v2685_v37, %s3858_s29 }
 0xfb7   : > { %v1732_v39 = vpop.f32.mrf.mxu1 }
 0xfc0   : > { %v2688_v40 = vpop.f32.mrf.mxu1 }
 0xfc1   : > { %1760 = vrot.lane.b32.xlu0 %v2688_v40, %s3852_s23  ;;  %s2258_s23 = sshll.u32 %s550_s18, 4  ;;  %s3746_s23 = int_to_ptr.vmem [resolvable:$true] %s2258_s23 }
 0xfc2   : > { %v1742_v41 = vpop.f32.mrf.mxu1  ;;  %s2879_s22 = scalar_lea.vmem %s3746_s23, 128 }
 0xfc3   : > { %1756 = vrot.lane.b32.xlu1 %v1742_v41, %s3853_s19  ;;  %s2438_s19 = sshll.u32 %s3065_s28, 7  ;;  %p2880_p11 = scmp.ne.s32.totalorder %s3746_s23, %s2879_s22 }
 0xfc4   : > { %s3751_s24 = scalar_lea.hbm %s3807_s17, %s2438_s19  ;;  %s2953_s28 = smov [#allocation2]  }
 0xfc5   : > { %p2881_p12 = pnand %p2880_p11, %p3082_p5  ;;  %s2883_s29 = sshll.u32 %s2953_s28, 4  ;;  %s2884_s29 = int_to_ptr.vmem [resolvable:$false] %s2883_s29 }
 0xfc6   : > { %s2885_s0 = scalar_lea.vmem %s2884_s29, 256  ;;  %p2886_p0 = scmp.lt.s32.totalorder %s3746_s23, %s2884_s29 }
 0xfc7   : > { %p2882_p13 = pneg %p2881_p12  ;;  %p2887_p1 = scmp.lt.s32.totalorder %s2885_s0, %s2879_s22 }
 0xfc9   : > { %p2888_p2 = por %p2887_p1, %p2886_p0 }
 0xfcb   : > { %p2889_p3 = pnand %p2888_p2, %p2882_p13 }
0x1028   : > { %v1753_v42 = vpop.permute.xlu0 %1752 }
0x1029   : > { %v1763_v43 = vsel %vm574_vm2, %v1732_v39, %v1753_v42  ;;  %v2417_v39 = vld [vmem:[%s3803_s13 + $0x1] ss:$0 sm:$0xff] }
0x1033   : > { %v1761_v45 = vpop.permute.xlu0 %1760 }
0x1035   : > { %v1757_v44 = vpop.permute.xlu1 %1756 }
0x1036   : > { %v1764_v46 = vsel %vm576_vm3, %v1763_v43, %v1757_v44  ;;  %v2121_v44 = vld [vmem:[%s3806_s16 + $0x78] sm:$0xff] }
0x1037   : > { %v1765_v47 = vsel %vm578_vm4, %v1764_v46, %v1761_v45  ;;  %v2120_v45 = vld [vmem:[%s3806_s16 + $0x70] sm:$0xff]  ;;  %v2119_v46 = vld [vmem:[%s3806_s16 + $0x68] sm:$0xff] }
0x1038   : > { %2698 = vmatmul.mubr.msk.f32.vlgmr.msra.gmra.mxu0 %vm641_vm0, %v1765_v47  ;;  %v2118_v47 = vld [vmem:[%s3806_s16 + $0x60] sm:$0xff] }
0x1039   : > { %2743 = vmatprep.mubr.msk.f32.mxu0 %vm2942_vm1, %v2941_v8  ;;  %2712 = vmatpush3.msra.mxu0 %v2415_v1 }
0x103a   : > { %2713 = vmatprep.subr.mxu0 %v2941_v8 }
0x103b   : > { %2714 = vmatpush3.msra.mxu0 %v2414_v5 }
0x103c   : > { %2715 = vmatprep.subr.mxu0 %v2941_v8 }
0x103d   : > { %2716 = vmatpush3.msra.mxu0 %v2413_v6 }
0x103e   : > { %2717 = vmatprep.subr.mxu0 %v2941_v8 }
0x103f   : > { %2718 = vmatpush3.msra.mxu0 %v2412_v7 }
0x1040   : > { %2719 = vmatprep.subr.mxu0 %v2941_v8 }
0x1041   : > { %2720 = vmatpush3.msra.mxu0 %v2411_v9 }
0x1042   : > { %2721 = vmatprep.subr.mxu0 %v2941_v8 }
0x1043   : > { %2722 = vmatpush3.msra.mxu0 %v2410_v12 }
0x1044   : > { %2723 = vmatprep.subr.mxu0 %v2941_v8 }
0x1045   : > { %2724 = vmatpush3.msra.mxu0 %v2409_v14 }
0x1046   : > { %2725 = vmatprep.subr.mxu0 %v2941_v8 }
0x1047   : > { %2726 = vmatpush3.msra.mxu0 %v2408_v15 }
0x1048   : > { %2727 = vmatprep.subr.mxu0 %v2941_v8 }
0x1049   : > { %2728 = vmatpush3.msra.mxu0 %v2407_v16 }
0x104a   : > { %2729 = vmatprep.subr.mxu0 %v2941_v8 }
0x104b   : > { %2730 = vmatpush3.msra.mxu0 %v2406_v18 }
0x104c   : > { %2731 = vmatprep.subr.mxu0 %v2941_v8 }
0x104d   : > { %2732 = vmatpush3.msra.mxu0 %v2405_v19 }
0x104e   : > { %2733 = vmatprep.subr.mxu0 %v2941_v8 }
0x104f   : > { %2734 = vmatpush3.msra.mxu0 %v2404_v20 }
0x1050   : > { %2735 = vmatprep.subr.mxu0 %v2941_v8 }
0x1051   : > { %2736 = vmatpush3.msra.mxu0 %v2403_v17 }
0x1052   : > { %2737 = vmatprep.subr.mxu0 %v2941_v8 }
0x1053   : > { %2738 = vmatpush3.msra.mxu0 %v2402_v21 }
0x1054   : > { %2739 = vmatprep.subr.mxu0 %v2941_v8 }
0x1055   : > { %2740 = vmatpush3.msra.mxu0 %v2401_v22 }
0x1056   : > { %2741 = vmatprep.subr.mxu0 %v2941_v8 }
0x1057   : > { %2742 = vmatpush3.msra.mxu0 %v2400_v24 }
0x10f8   : > { %v1840_v48 = vpop.f32.mrf.mxu0 }
0x10f9   : > { %v1844_v50 = vadd.f32 %v1840_v48, %v3418_v11  ;;  %v2395_v11 = vld [vmem:[%s3800_s10 + $0x30] sm:$0xff]  ;;  %v2117_v48 = vld [vmem:[%s3806_s16 + $0x58] sm:$0xff] }
0x10fa   : > { %v2699_v28 = vpop.f32.mrf.mxu0  ;;  %2703 = vmatpush3.msra.mxu1 %v2395_v11  ;;  %v2110_v11 = vld [vmem:[%s3806_s16 + $0x20] sm:$0xff] }
0x10fb   : > { %v3555_v51 = vadd.f32 %v2388_v49, %v1844_v50  ;;  %2704 = vmatprep.subr.mxu1 %v2941_v8  ;;  %v2116_v49 = vld [vmem:[%s3806_s16 + $0x50] sm:$0xff]  ;;  %v2115_v50 = vld [vmem:[%s3806_s16 + $0x48] sm:$0xff]  ;;  %v2114_v28 = vld [vmem:[%s3806_s16 + $0x40] sm:$0xff] }
0x10fc   : > { %2705 = vmatpush3.msra.mxu1 %v2394_v56  ;;  %v2109_v56 = vld [vmem:[%s3806_s16 + $0x18] sm:$0xff] }
0x10fd   : > { %v1858_v23 = vsel %vm641_vm0, %v3555_v51, 0.0  ;;  %2706 = vmatprep.subr.mxu1 %v2941_v8 }
0x10fe   : > { %1859 = vadd.xlane.f32.xlu1 %v1858_v23  ;;  %2707 = vmatpush3.msra.mxu1 %v2393_v13  ;;  %v2112_v23 = vld [vmem:[%s3806_s16 + $0x30] sm:$0xff] }
0x10ff   : > { %2746 = vmatprep.subr.mxu1 %v2941_v8  ;;  %v2108_v13 = vld [vmem:[%s3806_s16 + $0x10] sm:$0xff] }
0x1187   : > { %v1860_v52 = vpop.xlane.xlu1 %1859 }
0x1188   : > { %v1861_v53 = vmul.f32 0.03125, %v1860_v52 }
0x118a   : > { %v1862_v3 = vsub.f32 %v3555_v51, %v1861_v53 }
0x118c   : > { %v1863_v54 = vmul.f32 %v1862_v3, %v1862_v3 }
0x118e   : > { %v1864_v4 = vsel %vm641_vm0, %v1863_v54, 0.0 }
0x118f   : > { %1865 = vadd.xlane.f32.xlu0 %v1864_v4 }
0x1218   : > { %v1866_v57 = vpop.xlane.xlu0 %1865 }
0x1219   : > { %v1867_v58 = vmul.f32 0.03125, %v1866_v57  ;;  %v2107_v57 = vld [vmem:[%s3806_s16 + $0x8] sm:$0xff] }
0x121b   : > { %v1868_v59 = vadd.f32 1e-05, %v1867_v58  ;;  %v2106_v58 = vld [vmem:[%s3806_s16] sm:$0xff] }
0x121d   : > { %2873 = vrsqrt.f32 %v1868_v59 }
0x122a   : > { %v2874_v60 = vpop.eup %2873 }
0x122b   : > { %v1870_v10 = vmul.f32 %v2874_v60, %v1862_v3 }
0x122d   : > { %v1877_v62 = vmul.f32 %v2391_v61, %v1870_v10 }
0x122f   : > { %v1884_v63 = vadd.f32 %v2392_v2, %v1877_v62  ;;  %v2418_v2 = vld [vmem:[%s3804_s14] ss:$0 sm:$0xff] }
0x1231   : > { %2709 = vmatmul.mubr.msk.f32.vlgmr.msra.gmra.mxu1 %vm641_vm0, %v1884_v63 }
0x1232   : > { %2778 = vmatprep.mubr.msk.f32.mxu1 %vm2942_vm1, %v2941_v8  ;;  %2747 = vmatpush3.xpose.msk.msra.mxu1 %vm641_vm0, %v2121_v44 }
0x1233   : > { %2748 = vmatprep.subr.mxu1 %v2941_v8 }
0x1236   : > { %2749 = vmatpush3.xpose.msk.msra.mxu1 %vm641_vm0, %v2120_v45 }
0x1237   : > { %2750 = vmatprep.subr.mxu1 %v2941_v8 }
0x123a   : > { %2751 = vmatpush3.xpose.msk.msra.mxu1 %vm641_vm0, %v2119_v46 }
0x123b   : > { %2752 = vmatprep.subr.mxu1 %v2941_v8 }
0x123e   : > { %2753 = vmatpush3.xpose.msk.msra.mxu1 %vm641_vm0, %v2118_v47 }
0x123f   : > { %2754 = vmatprep.subr.mxu1 %v2941_v8 }
0x1242   : > { %2755 = vmatpush3.xpose.msk.msra.mxu1 %vm641_vm0, %v2117_v48 }
0x1243   : > { %2756 = vmatprep.subr.mxu1 %v2941_v8 }
0x1246   : > { %2757 = vmatpush3.xpose.msk.msra.mxu1 %vm641_vm0, %v2116_v49 }
0x1247   : > { %2758 = vmatprep.subr.mxu1 %v2941_v8 }
0x124a   : > { %2759 = vmatpush3.xpose.msk.msra.mxu1 %vm641_vm0, %v2115_v50 }
0x124b   : > { %2760 = vmatprep.subr.mxu1 %v2941_v8 }
0x124e   : > { %2761 = vmatpush3.xpose.msk.msra.mxu1 %vm641_vm0, %v2114_v28 }
0x124f   : > { %2762 = vmatprep.subr.mxu1 %v2941_v8 }
0x12f1   : > { %v1967_v0 = vpop.f32.mrf.mxu1 }
0x12f2   : > { %v1968_v29 = vadd.f32 %v2398_v25, %v1967_v0 }
0x12f3   : > { %v2710_v30 = vpop.f32.mrf.mxu1 }
0x12f4   : > { %v1972_v31 = vmul.f32 0.044715, %v1968_v29  ;;  %v1971_v27 = vmul.f32 0.5, %v1968_v29 }
0x12f6   : > { %v1973_v32 = vmul.f32 %v1972_v31, %v1968_v29 }
0x12f8   : > { %v1974_v33 = vmul.f32 %v1973_v32, %v1968_v29 }
0x12fa   : > { %v1975_v34 = vadd.f32 %v1974_v33, %v1968_v29 }
0x12fc   : > { %v1976_v35 = vmul.f32 0.7978846, %v1975_v34 }
0x12fe   : > { %2875 = vtanh.f32 %v1976_v35 }
0x130b   : > { %v2876_v36 = vpop.eup %2875 }
0x130c   : > { %v1978_v26 = vadd.f32 1.0, %v2876_v36 }
0x130e   : > { %v1979_v37 = vmul.f32 %v1978_v26, %v1971_v27 }
0x1310   : > { %2744 = vmatmul.mubr.f32.vlgmr.msra.gmra.mxu0 %v1979_v37 }
0x13d0   : > { %v2063_v38 = vpop.f32.mrf.mxu0 }
0x13d1   : > { %v2067_v40 = vadd.f32 %v2063_v38, %v3555_v51  ;;  %v2113_v51 = vld [vmem:[%s3806_s16 + $0x38] sm:$0xff] }
0x13d2   : > { %v2745_v41 = vpop.f32.mrf.mxu0  ;;  %2763 = vmatpush3.xpose.msk.msra.mxu1 %vm641_vm0, %v2113_v51 }
0x13d3   : > { %v2076_v42 = vadd.f32 %v2417_v39, %v2067_v40  ;;  %2764 = vmatprep.subr.mxu1 %v2941_v8 }
0x13d5   : > { %v2079_v43 = vsel %vm641_vm0, %v2076_v42, 0.0 }
0x13d6   : > { %2080 = vadd.xlane.f32.xlu0 %v2079_v43  ;;  %2765 = vmatpush3.xpose.msk.msra.mxu1 %vm641_vm0, %v2112_v23 }
0x13d7   : > { %2766 = vmatprep.subr.mxu1 %v2941_v8 }
0x13da   : > { %2767 = vmatpush3.xpose.msk.msra.mxu1 %vm641_vm0, %v2111_v55 }
0x13db   : > { %2768 = vmatprep.subr.mxu1 %v2941_v8 }
0x13de   : > { %2769 = vmatpush3.xpose.msk.msra.mxu1 %vm641_vm0, %v2110_v11 }
0x13df   : > { %2770 = vmatprep.subr.mxu1 %v2941_v8 }
0x13e2   : > { %2771 = vmatpush3.xpose.msk.msra.mxu1 %vm641_vm0, %v2109_v56 }
0x13e3   : > { %2772 = vmatprep.subr.mxu1 %v2941_v8 }
0x13e6   : > { %2773 = vmatpush3.xpose.msk.msra.mxu1 %vm641_vm0, %v2108_v13 }
0x13e7   : > { %2774 = vmatprep.subr.mxu1 %v2941_v8 }
0x13ea   : > { %2775 = vmatpush3.xpose.msk.msra.mxu1 %vm641_vm0, %v2107_v57 }
0x13eb   : > { %2776 = vmatprep.subr.mxu1 %v2941_v8  ;;  %v2419_v8 = vld [vmem:[%s3805_s15] ss:$0 sm:$0xff] }
0x13ee   : > { %2777 = vmatpush3.xpose.msk.msra.mxu1 %vm641_vm0, %v2106_v58 }
0x145f   : > { %v2081_v52 = vpop.xlane.xlu0 %2080 }
0x1460   : > { %v2082_v53 = vmul.f32 0.03125, %v2081_v52 }
0x1462   : > { %v2083_v3 = vsub.f32 %v2076_v42, %v2082_v53 }
0x1464   : > { %v2084_v54 = vmul.f32 %v2083_v3, %v2083_v3 }
0x1466   : > { %v2085_v4 = vsel %vm641_vm0, %v2084_v54, 0.0 }
0x1467   : > { %2086 = vadd.xlane.f32.xlu1 %v2085_v4 }
0x14f0   : > { %v2087_v59 = vpop.xlane.xlu1 %2086 }
0x14f1   : > { %v2088_v60 = vmul.f32 0.03125, %v2087_v59 }
0x14f3   : > { %v2089_v61 = vadd.f32 1e-05, %v2088_v60 }
0x14f5   : > { %2877 = vrsqrt.f32 %v2089_v61 }
0x1502   : > { %v2878_v10 = vpop.eup %2877 }
0x1503   : > { %v2091_v62 = vmul.f32 %v2878_v10, %v2083_v3 }
0x1505   : > { %v2098_v63 = vmul.f32 %v2418_v2, %v2091_v62 }
0x1507   : > { %v2105_v1 = vadd.f32 %v2419_v8, %v2098_v63 }
0x1509   : > { %2779 = vmatmul.mubr.msk.f32.vlgmr.msra.gmra.mxu1 %vm641_vm0, %v2105_v1 }
0x15c9   : > { %v2239_v5 = vpop.f32.mrf.mxu1 }
0x15ca   : > { %2243 = vst [vmem:[%s550_s18] sm:$0xff] %v2239_v5 }
0x15cb   : > { %v2780_v6 = vpop.f32.mrf.mxu1 }
0x15cc   : > { %2892 = shalt.err (!%p2889_p3)
}
0x15cd   : > { %s2893_s18 = scalar_lea.hbm %s3751_s24, 128  ;;  %s2897_s26 = scalar_lea.hbm %s3807_s17, 256 }
0x15ce   : > { %p2894_p4 = scmp.ne.s32.totalorder %s3751_s24, %s2893_s18  ;;  %p2898_p9 = scmp.lt.s32.totalorder %s3751_s24, %s3807_s17 }
0x15cf   : > { %p2899_p10 = scmp.lt.s32.totalorder %s2897_s26, %s2893_s18 }
0x15d0   : > { %p2895_p7 = pnand %p2894_p4, %p3082_p5 }
0x15d1   : > { %p2900_p11 = por %p2899_p10, %p2898_p9 }
0x15d2   : > { %p2896_p8 = pneg %p2895_p7 }
0x15d4   : > { %p2901_p12 = pnand %p2900_p11, %p2896_p8 }
0x15d6   : > { %2904 = shalt.err (!%p2901_p12)
}
0x15d7   : > { %2781 = dma.vmem_to_hbm [thread:$0]  (%p3082_p5), %s3746_s23, 128, %s3751_s24, %s2245_s20  }
0x15d8 PF: > { %s3859_s22 = sld [smem:[#allocation5_spill]]  ;;  %p2787_p13 = scmp.ge.s32.totalorder %s2939_s27, 2 }
0x15da   : > { %p2784_p0 = pnand %p2787_p13, %p3086_p6 }
0x15dc   : > { %p2785_p1 = pneg %p2784_p0 }
0x15de   : > { %s2270_s0 = sand.u32 1, %s3859_s22  }
0x15df   : > { %s2271_s21 = scalar_lea.sflag [#allocation3], %s2270_s0 }
0x15e0   : > { %2922 = dma.done.wait (%p2785_p1), %s2271_s21, 128  }
0x15e1   : > { %2924 = vsyncadd (%p2785_p1), %s2271_s21, 4294967168  ;;  %s3861_s27 = sld [smem:[#allocation7_spill]]  ;;  %s3864_s24 = smov %s2931_s25 }
0x15e2   : > { %s3862_s18 = sld [smem:[#allocation6_spill]] }
0x15e3   : > { %s3863_s26 = sld [smem:[#allocation8_spill]] }
0x15e7   : > { %p27_p2 = scmp.ge.s32.totalorder %s3861_s27, 4  }
0x15e8   : > { %s3865_s25 = smov %s3862_s18 }
0x15e9   :  { %29 = sbr.rel (!%p27_p2) target bundleno = 6 (0x6), region = 138 }
0x15ee   :  { %2276 = vsyncpa [#allocation3], 1 }
0x15ef   :  { %2278 = vsyncpa [#allocation3 + $0x1], 1 }

</bundles_post_ra>
